<compile_context>
chip_gen: v5e
topology: v5e:2x2
jax: 0.10.0
libtpu: 0.0.40
codegen_flags: <defaults>
</compile_context>

<pallas_src>
import functools

import jax
import jax.numpy as jnp
from jax import lax
from jax.experimental import pallas as pl
from jax.experimental.pallas import tpu as pltpu


def _ff_resnet_kernel(x_ref, w_ref, b_ref, g_ref, be_ref, o_ref, *,
                      n_layers: int, eps: float):
    """One row-tile of FFResNetBlock: n_layers x (Linear -> LayerNorm -> ReLU) + residual."""
    x = x_ref[...].astype(jnp.float32)                       # (bm, D)
    res = x
    D = x.shape[-1]
    inv_d = jnp.float32(1.0 / D)

    # Hoist the (1, D) -> (bm, D) broadcasts out of the unrolled loop.
    gamma_b = jnp.broadcast_to(g_ref[...].astype(jnp.float32), x.shape)
    beta_b = jnp.broadcast_to(be_ref[...].astype(jnp.float32), x.shape)

    # Static Python loop -> unrolled at trace time (n_layers is small & fixed).
    for l in range(n_layers):
        # Linear: single-pass bf16 MXU matmul, f32 accumulation.
        w = w_ref[l].astype(jnp.bfloat16)                    # (D, D)
        b = b_ref[l].astype(jnp.float32)                     # (1, D)
        h = jnp.dot(x.astype(jnp.bfloat16), w,
                    preferred_element_type=jnp.float32) + b

        # LayerNorm over the feature (lane) axis -- shared gamma/beta.
        # Both cross-lane reductions issue back-to-back on the XLU.
        s1 = jnp.sum(h, axis=-1, keepdims=True)
        s2 = jnp.sum(h * h, axis=-1, keepdims=True)
        mu = s1 * inv_d
        var = s2 * inv_d - mu * mu
        inv = lax.rsqrt(var + jnp.float32(eps))
        # Affine + ReLU (VPU), kept in f32.
        x = jnp.maximum((h - mu) * inv * gamma_b + beta_b, jnp.float32(0.0))

    o_ref[...] = (x + res).astype(o_ref.dtype)


def _choose_row_tile(rows: int, block_m: int, sublane: int):
    """Pick (bm, padded_rows).

    Prefers a divisor of `rows` (avoids the XLA pad + slice round trip) that is
    a multiple of the dtype's sublane tile and, when possible, keeps >= 2 grid
    steps so the parallel grid axis can shard across v7x's 2 TensorCores.
    """
    cap = min(block_m, rows)
    if rows >= 2 * sublane:
        cap = min(cap, rows // 2)            # keep >= 2 grid steps when feasible
    cap = max(sublane, (cap // sublane) * sublane)

    best = 0
    d = sublane
    while d <= cap:                           # trace-time only; <= block_m/sublane iters
        if rows % d == 0:
            best = d
        d += sublane
    if best:
        return best, rows

    # Ragged fallback: pad (costs one extra pad + slice pass over x in XLA).
    bm = cap
    padded = ((rows + bm - 1) // bm) * bm
    return bm, padded


def ff_resnet_block_forward(x, weights, biases, gamma, beta, *,
                            eps: float = 1e-5, block_m: int = 1024):
    """FFResNetBlock forward.

    x:       (..., D)
    weights: (n_layers, D, D)   -- layer l computes x @ weights[l] + biases[l]
    biases:  (n_layers, 1, D)
    gamma:   (1, D), beta: (1, D)   -- shared LayerNorm affine params
    """
    n_layers, D_in, D_out = weights.shape
    assert D_in == D_out == x.shape[-1], "residual requires in_features == out_features"
    D = D_out

    orig_shape = x.shape
    x2 = x.reshape(-1, D)                     # lane-dense 2-D slab
    rows = x2.shape[0]

    sublane = 16 if x2.dtype == jnp.bfloat16 else 8
    bm, padded_rows = _choose_row_tile(rows, block_m, sublane)
    if padded_rows != rows:
        x2 = jnp.pad(x2, ((0, padded_rows - rows), (0, 0)))

    kernel = functools.partial(_ff_resnet_kernel, n_layers=n_layers, eps=float(eps))

    out = pl.pallas_call(
        kernel,
        out_shape=jax.ShapeDtypeStruct((padded_rows, D), x.dtype),
        grid_spec=pltpu.PrefetchScalarGridSpec(
            num_scalar_prefetch=0,
            grid=(padded_rows // bm,),
            in_specs=[
                # x: streamed over rows, auto double-buffered by the pipeline.
                pl.BlockSpec((bm, D), lambda i: (i, 0)),
                # Constant-index params stay VMEM-resident across all grid steps.
                # (For D >~ 1k, store these as bf16 and raise vmem_limit_bytes
                #  to stay within v7x's smaller VMEM; irrelevant at D=128.)
                pl.BlockSpec((n_layers, D, D), lambda i: (0, 0, 0)),
                pl.BlockSpec((n_layers, 1, D), lambda i: (0, 0, 0)),
                pl.BlockSpec((1, D), lambda i: (0, 0)),
                pl.BlockSpec((1, D), lambda i: (0, 0)),
            ],
            out_specs=pl.BlockSpec((bm, D), lambda i: (i, 0)),
        ),
        compiler_params=pltpu.CompilerParams(
            # Row tiles are independent -> shardable across v7x's 2 TCs.
            dimension_semantics=("parallel",),
        ),
    )(x2, weights, biases, gamma, beta)

    if padded_rows != rows:
        out = out[:rows]
    return out.reshape(orig_shape)


def _ff_resnet_block_ref(x, weights, biases, gamma, beta, eps=1e-5, mxu_bf16=False):
    """Pure-JAX reference (mirrors the PyTorch module's forward).

    mxu_bf16=True uses the same bf16-input / f32-accumulate matmul as the kernel
    (tight structural check); False is the full-f32 PyTorch-semantics reference.
    """
    D = x.shape[-1]
    h = x.reshape(-1, D).astype(jnp.float32)
    res = h
    for l in range(weights.shape[0]):
        if mxu_bf16:
            h = jnp.dot(h.astype(jnp.bfloat16), weights[l].astype(jnp.bfloat16),
                        preferred_element_type=jnp.float32) + biases[l, 0]
        else:
            h = jnp.dot(h, weights[l], precision=lax.Precision.HIGHEST) + biases[l, 0]
        mu = jnp.mean(h, axis=-1, keepdims=True)
        var = jnp.mean((h - mu) ** 2, axis=-1, keepdims=True)
        h = (h - mu) * lax.rsqrt(var + eps)
        h = jax.nn.relu(h * gamma[0] + beta[0])
    return (h + res).reshape(x.shape).astype(x.dtype)


if __name__ == "__main__":
    SEQ, BATCH, D, N_LAYERS = 16, 8, 128, 3   # in_features == out_features == 128

    key = jax.random.PRNGKey(0)
    kx, kw, kb = jax.random.split(key, 3)

    x = jax.random.normal(kx, (SEQ, BATCH, D), dtype=jnp.float32)

    # nn.Linear-style init (uniform in [-1/sqrt(D), 1/sqrt(D)]), pre-transposed
    # to (in, out) so the kernel does x @ W + b.
    bound = 1.0 / (D ** 0.5)
    weights = jax.random.uniform(kw, (N_LAYERS, D, D), jnp.float32, -bound, bound)
    biases = jax.random.uniform(kb, (N_LAYERS, 1, D), jnp.float32, -bound, bound)
    # nn.LayerNorm default init.
    gamma = jnp.ones((1, D), jnp.float32)
    beta = jnp.zeros((1, D), jnp.float32)

    out = ff_resnet_block_forward(x, weights, biases, gamma, beta)
    out = jax.block_until_ready(out)
    assert out.shape == x.shape

    # Tight check vs a reference using the same bf16-input MXU matmul
    # (validates LayerNorm / ReLU / residual structure of the kernel).
    ref_bf16 = _ff_resnet_block_ref(x, weights, biases, gamma, beta, mxu_bf16=True)
    assert jnp.allclose(out, ref_bf16, atol=5e-3, rtol=5e-3), \
        "FFResNetBlock mismatch vs bf16-matmul reference"

    # Looser check vs the full-f32 module semantics (bf16 MXU inputs introduce
    # ~1e-2-level error through 3 matmul+LayerNorm layers).
    ref_f32 = _ff_resnet_block_ref(x, weights, biases, gamma, beta)
    assert jnp.allclose(out, ref_f32, atol=7e-2, rtol=7e-2), \
        "FFResNetBlock mismatch vs f32 reference"

    print("KERNEL_OK")
</pallas_src>

<mosaic_0001>
module attributes {stable_mosaic.version = 11 : i64} {
  func.func @_ff_resnet_kernel(%arg0: i32, %arg1: memref<64x128xf32, #tpu.memory_space<vmem>>, %arg2: memref<3x128x128xf32, #tpu.memory_space<vmem>>, %arg3: memref<3x1x128xf32, #tpu.memory_space<vmem>>, %arg4: memref<1x128xf32, #tpu.memory_space<vmem>>, %arg5: memref<1x128xf32, #tpu.memory_space<vmem>>, %arg6: memref<64x128xf32, #tpu.memory_space<vmem>>) attributes {dimension_semantics = [#tpu.dimension_semantics<parallel>], iteration_bounds = array<i64: 2>, scalar_prefetch = 0 : i64, scratch_operands = 0 : i64, tpu.core_type = #tpu.core_type<tc>, window_params = [{transform_indices = @transform_0, window_bounds = array<i64: 64, 128>}, {pipeline_mode = #tpu.pipeline_mode<synchronous>, transform_indices = @transform_1, window_bounds = array<i64: 3, 128, 128>}, {pipeline_mode = #tpu.pipeline_mode<synchronous>, transform_indices = @transform_2, window_bounds = array<i64: 3, 1, 128>}, {pipeline_mode = #tpu.pipeline_mode<synchronous>, transform_indices = @transform_3, window_bounds = array<i64: 1, 128>}, {pipeline_mode = #tpu.pipeline_mode<synchronous>, transform_indices = @transform_4, window_bounds = array<i64: 1, 128>}, {transform_indices = @transform_5, window_bounds = array<i64: 64, 128>}]} {
    %c0 = arith.constant 0 : index
    %c0_0 = arith.constant 0 : index
    %0 = vector.load %arg1[%c0, %c0_0] : memref<64x128xf32, #tpu.memory_space<vmem>>, vector<64x128xf32>
    %c0_1 = arith.constant 0 : index
    %c0_2 = arith.constant 0 : index
    %1 = vector.load %arg4[%c0_1, %c0_2] : memref<1x128xf32, #tpu.memory_space<vmem>>, vector<1x128xf32>
    %2 = vector.shape_cast %1 : vector<1x128xf32> to vector<1x128xf32>
    %3 = vector.broadcast %2 : vector<1x128xf32> to vector<64x128xf32>
    %c0_3 = arith.constant 0 : index
    %c0_4 = arith.constant 0 : index
    %4 = vector.load %arg5[%c0_3, %c0_4] : memref<1x128xf32, #tpu.memory_space<vmem>>, vector<1x128xf32>
    %5 = vector.shape_cast %4 : vector<1x128xf32> to vector<1x128xf32>
    %6 = vector.broadcast %5 : vector<1x128xf32> to vector<64x128xf32>
    %c0_5 = arith.constant 0 : index
    %c0_6 = arith.constant 0 : index
    %c0_7 = arith.constant 0 : index
    %7 = vector.load %arg2[%c0_5, %c0_6, %c0_7] : memref<3x128x128xf32, #tpu.memory_space<vmem>>, vector<1x128x128xf32>
    %8 = vector.shape_cast %7 : vector<1x128x128xf32> to vector<128x128xf32>
    %9 = arith.truncf %8 : vector<128x128xf32> to vector<128x128xbf16>
    %c0_8 = arith.constant 0 : index
    %c0_9 = arith.constant 0 : index
    %c0_10 = arith.constant 0 : index
    %10 = vector.load %arg3[%c0_8, %c0_9, %c0_10] : memref<3x1x128xf32, #tpu.memory_space<vmem>>, vector<1x1x128xf32>
    %11 = vector.shape_cast %10 : vector<1x1x128xf32> to vector<1x128xf32>
    %12 = arith.truncf %0 : vector<64x128xf32> to vector<64x128xbf16>
    %cst = arith.constant dense<0.000000e+00> : vector<64x128xf32>
    %13 = tpu.matmul %12, %9, %cst {dimension_numbers = #tpu.dot_dimension_numbers<[1], [0], [0], [1], [0, 0, 1, 1], [], []>} : vector<64x128xbf16>, vector<128x128xbf16>, vector<64x128xf32> -> vector<64x128xf32>
    %14 = vector.broadcast %11 : vector<1x128xf32> to vector<64x128xf32>
    %15 = arith.addf %13, %14 : vector<64x128xf32>
    %cst_11 = arith.constant dense<0.000000e+00> : vector<64xf32>
    %16 = vector.multi_reduction <add>, %15, %cst_11 [1] : vector<64x128xf32> to vector<64xf32>
    %17 = vector.shape_cast %16 : vector<64xf32> to vector<64x1xf32>
    %18 = arith.mulf %15, %15 : vector<64x128xf32>
    %cst_12 = arith.constant dense<0.000000e+00> : vector<64xf32>
    %19 = vector.multi_reduction <add>, %18, %cst_12 [1] : vector<64x128xf32> to vector<64xf32>
    %20 = vector.shape_cast %19 : vector<64xf32> to vector<64x1xf32>
    %cst_13 = arith.constant 7.812500e-03 : f32
    %21 = vector.broadcast %cst_13 : f32 to vector<64x1xf32>
    %22 = arith.mulf %17, %21 : vector<64x1xf32>
    %cst_14 = arith.constant 7.812500e-03 : f32
    %23 = vector.broadcast %cst_14 : f32 to vector<64x1xf32>
    %24 = arith.mulf %20, %23 : vector<64x1xf32>
    %25 = arith.mulf %22, %22 : vector<64x1xf32>
    %26 = arith.subf %24, %25 : vector<64x1xf32>
    %cst_15 = arith.constant 9.99999974E-6 : f32
    %27 = vector.broadcast %cst_15 : f32 to vector<64x1xf32>
    %28 = arith.addf %26, %27 : vector<64x1xf32>
    %29 = math.rsqrt %28 : vector<64x1xf32>
    %30 = vector.broadcast %22 : vector<64x1xf32> to vector<64x128xf32>
    %31 = arith.subf %15, %30 : vector<64x128xf32>
    %32 = vector.broadcast %29 : vector<64x1xf32> to vector<64x128xf32>
    %33 = arith.mulf %31, %32 : vector<64x128xf32>
    %34 = arith.mulf %33, %3 : vector<64x128xf32>
    %35 = arith.addf %34, %6 : vector<64x128xf32>
    %cst_16 = arith.constant 0.000000e+00 : f32
    %36 = vector.broadcast %cst_16 : f32 to vector<64x128xf32>
    %37 = arith.maximumf %35, %36 : vector<64x128xf32>
    %c1 = arith.constant 1 : index
    %c0_17 = arith.constant 0 : index
    %c0_18 = arith.constant 0 : index
    %38 = vector.load %arg2[%c1, %c0_17, %c0_18] : memref<3x128x128xf32, #tpu.memory_space<vmem>>, vector<1x128x128xf32>
    %39 = vector.shape_cast %38 : vector<1x128x128xf32> to vector<128x128xf32>
    %40 = arith.truncf %39 : vector<128x128xf32> to vector<128x128xbf16>
    %c1_19 = arith.constant 1 : index
    %c0_20 = arith.constant 0 : index
    %c0_21 = arith.constant 0 : index
    %41 = vector.load %arg3[%c1_19, %c0_20, %c0_21] : memref<3x1x128xf32, #tpu.memory_space<vmem>>, vector<1x1x128xf32>
    %42 = vector.shape_cast %41 : vector<1x1x128xf32> to vector<1x128xf32>
    %43 = arith.truncf %37 : vector<64x128xf32> to vector<64x128xbf16>
    %cst_22 = arith.constant dense<0.000000e+00> : vector<64x128xf32>
    %44 = tpu.matmul %43, %40, %cst_22 {dimension_numbers = #tpu.dot_dimension_numbers<[1], [0], [0], [1], [0, 0, 1, 1], [], []>} : vector<64x128xbf16>, vector<128x128xbf16>, vector<64x128xf32> -> vector<64x128xf32>
    %45 = vector.broadcast %42 : vector<1x128xf32> to vector<64x128xf32>
    %46 = arith.addf %44, %45 : vector<64x128xf32>
    %cst_23 = arith.constant dense<0.000000e+00> : vector<64xf32>
    %47 = vector.multi_reduction <add>, %46, %cst_23 [1] : vector<64x128xf32> to vector<64xf32>
    %48 = vector.shape_cast %47 : vector<64xf32> to vector<64x1xf32>
    %49 = arith.mulf %46, %46 : vector<64x128xf32>
    %cst_24 = arith.constant dense<0.000000e+00> : vector<64xf32>
    %50 = vector.multi_reduction <add>, %49, %cst_24 [1] : vector<64x128xf32> to vector<64xf32>
    %51 = vector.shape_cast %50 : vector<64xf32> to vector<64x1xf32>
    %cst_25 = arith.constant 7.812500e-03 : f32
    %52 = vector.broadcast %cst_25 : f32 to vector<64x1xf32>
    %53 = arith.mulf %48, %52 : vector<64x1xf32>
    %cst_26 = arith.constant 7.812500e-03 : f32
    %54 = vector.broadcast %cst_26 : f32 to vector<64x1xf32>
    %55 = arith.mulf %51, %54 : vector<64x1xf32>
    %56 = arith.mulf %53, %53 : vector<64x1xf32>
    %57 = arith.subf %55, %56 : vector<64x1xf32>
    %cst_27 = arith.constant 9.99999974E-6 : f32
    %58 = vector.broadcast %cst_27 : f32 to vector<64x1xf32>
    %59 = arith.addf %57, %58 : vector<64x1xf32>
    %60 = math.rsqrt %59 : vector<64x1xf32>
    %61 = vector.broadcast %53 : vector<64x1xf32> to vector<64x128xf32>
    %62 = arith.subf %46, %61 : vector<64x128xf32>
    %63 = vector.broadcast %60 : vector<64x1xf32> to vector<64x128xf32>
    %64 = arith.mulf %62, %63 : vector<64x128xf32>
    %65 = arith.mulf %64, %3 : vector<64x128xf32>
    %66 = arith.addf %65, %6 : vector<64x128xf32>
    %cst_28 = arith.constant 0.000000e+00 : f32
    %67 = vector.broadcast %cst_28 : f32 to vector<64x128xf32>
    %68 = arith.maximumf %66, %67 : vector<64x128xf32>
    %c2 = arith.constant 2 : index
    %c0_29 = arith.constant 0 : index
    %c0_30 = arith.constant 0 : index
    %69 = vector.load %arg2[%c2, %c0_29, %c0_30] : memref<3x128x128xf32, #tpu.memory_space<vmem>>, vector<1x128x128xf32>
    %70 = vector.shape_cast %69 : vector<1x128x128xf32> to vector<128x128xf32>
    %71 = arith.truncf %70 : vector<128x128xf32> to vector<128x128xbf16>
    %c2_31 = arith.constant 2 : index
    %c0_32 = arith.constant 0 : index
    %c0_33 = arith.constant 0 : index
    %72 = vector.load %arg3[%c2_31, %c0_32, %c0_33] : memref<3x1x128xf32, #tpu.memory_space<vmem>>, vector<1x1x128xf32>
    %73 = vector.shape_cast %72 : vector<1x1x128xf32> to vector<1x128xf32>
    %74 = arith.truncf %68 : vector<64x128xf32> to vector<64x128xbf16>
    %cst_34 = arith.constant dense<0.000000e+00> : vector<64x128xf32>
    %75 = tpu.matmul %74, %71, %cst_34 {dimension_numbers = #tpu.dot_dimension_numbers<[1], [0], [0], [1], [0, 0, 1, 1], [], []>} : vector<64x128xbf16>, vector<128x128xbf16>, vector<64x128xf32> -> vector<64x128xf32>
    %76 = vector.broadcast %73 : vector<1x128xf32> to vector<64x128xf32>
    %77 = arith.addf %75, %76 : vector<64x128xf32>
    %cst_35 = arith.constant dense<0.000000e+00> : vector<64xf32>
    %78 = vector.multi_reduction <add>, %77, %cst_35 [1] : vector<64x128xf32> to vector<64xf32>
    %79 = vector.shape_cast %78 : vector<64xf32> to vector<64x1xf32>
    %80 = arith.mulf %77, %77 : vector<64x128xf32>
    %cst_36 = arith.constant dense<0.000000e+00> : vector<64xf32>
    %81 = vector.multi_reduction <add>, %80, %cst_36 [1] : vector<64x128xf32> to vector<64xf32>
    %82 = vector.shape_cast %81 : vector<64xf32> to vector<64x1xf32>
    %cst_37 = arith.constant 7.812500e-03 : f32
    %83 = vector.broadcast %cst_37 : f32 to vector<64x1xf32>
    %84 = arith.mulf %79, %83 : vector<64x1xf32>
    %cst_38 = arith.constant 7.812500e-03 : f32
    %85 = vector.broadcast %cst_38 : f32 to vector<64x1xf32>
    %86 = arith.mulf %82, %85 : vector<64x1xf32>
    %87 = arith.mulf %84, %84 : vector<64x1xf32>
    %88 = arith.subf %86, %87 : vector<64x1xf32>
    %cst_39 = arith.constant 9.99999974E-6 : f32
    %89 = vector.broadcast %cst_39 : f32 to vector<64x1xf32>
    %90 = arith.addf %88, %89 : vector<64x1xf32>
    %91 = math.rsqrt %90 : vector<64x1xf32>
    %92 = vector.broadcast %84 : vector<64x1xf32> to vector<64x128xf32>
    %93 = arith.subf %77, %92 : vector<64x128xf32>
    %94 = vector.broadcast %91 : vector<64x1xf32> to vector<64x128xf32>
    %95 = arith.mulf %93, %94 : vector<64x128xf32>
    %96 = arith.mulf %95, %3 : vector<64x128xf32>
    %97 = arith.addf %96, %6 : vector<64x128xf32>
    %cst_40 = arith.constant 0.000000e+00 : f32
    %98 = vector.broadcast %cst_40 : f32 to vector<64x128xf32>
    %99 = arith.maximumf %97, %98 : vector<64x128xf32>
    %100 = arith.addf %99, %0 : vector<64x128xf32>
    %c0_41 = arith.constant 0 : index
    %c0_42 = arith.constant 0 : index
    %101 = vector.load %arg6[%c0_41, %c0_42] : memref<64x128xf32, #tpu.memory_space<vmem>>, vector<64x128xf32>
    tpu.vector_store %arg6[%c0_41, %c0_42], %100 {strides = array<i32>} : memref<64x128xf32, #tpu.memory_space<vmem>>, vector<64x128xf32>,
    return
  }
  func.func @transform_0(%arg0: i32) -> (i32, i32) {
    %c0_i32 = arith.constant 0 : i32
    %c0_i32_0 = arith.constant 0 : i32
    return %arg0, %c0_i32 : i32, i32
  }
  func.func @transform_1(%arg0: i32) -> (i32, i32, i32) {
    %c0_i32 = arith.constant 0 : i32
    %c0_i32_0 = arith.constant 0 : i32
    %c0_i32_1 = arith.constant 0 : i32
    %c0_i32_2 = arith.constant 0 : i32
    return %c0_i32, %c0_i32_0, %c0_i32_1 : i32, i32, i32
  }
  func.func @transform_2(%arg0: i32) -> (i32, i32, i32) {
    %c0_i32 = arith.constant 0 : i32
    %c0_i32_0 = arith.constant 0 : i32
    %c0_i32_1 = arith.constant 0 : i32
    %c0_i32_2 = arith.constant 0 : i32
    return %c0_i32, %c0_i32_0, %c0_i32_1 : i32, i32, i32
  }
  func.func @transform_3(%arg0: i32) -> (i32, i32) {
    %c0_i32 = arith.constant 0 : i32
    %c0_i32_0 = arith.constant 0 : i32
    %c0_i32_1 = arith.constant 0 : i32
    return %c0_i32, %c0_i32_0 : i32, i32
  }
  func.func @transform_4(%arg0: i32) -> (i32, i32) {
    %c0_i32 = arith.constant 0 : i32
    %c0_i32_0 = arith.constant 0 : i32
    %c0_i32_1 = arith.constant 0 : i32
    return %c0_i32, %c0_i32_0 : i32, i32
  }
  func.func @transform_5(%arg0: i32) -> (i32, i32) {
    %c0_i32 = arith.constant 0 : i32
    %c0_i32_0 = arith.constant 0 : i32
    return %arg0, %c0_i32 : i32, i32
  }
}

</mosaic_0001>

<bundles_post_ra>
// kernel: tpu_custom_call.1
= control target key start
LH: loop header
LB: loop body
LE: loop exit
PB: predicated region body
PF: predicated region fallthrough
CT: control target
= control target key end

     0   :  { %10 = vsyncpa [#allocation3], 0  ;;  %s2102_s0 = inlined_call_operand.hbm [shape: f32[128,128], index: 0, kind: input, shape index: {}]   ;;  %s2103_s1 = inlined_call_operand.hbm [shape: f32[3,128,128], index: 1, kind: input, shape index: {}]   ;;  %s2104_s2 = inlined_call_operand.hbm [shape: f32[3,1,128], index: 2, kind: input, shape index: {}]   ;;  %s2105_s3 = inlined_call_operand.vmem [shape: f32[1,128], index: 3, kind: input, shape index: {}]   ;;  %s2106_s4 = inlined_call_operand.vmem [shape: f32[1,128], index: 4, kind: input, shape index: {}]   ;;  %s2107_s5 = inlined_call_operand.hbm [shape: f32[128,128], index: 5, kind: output, shape index: {}]  }
   0x1   :  { %12 = vsyncpa [#allocation3 + $0x1], 0 }
   0x2   :  { %13 = vsyncpa [#allocation6], 0 }
   0x3   :  { %14 = vsyncpa [#allocation4], 0 }
   0x4   :  { %16 = vsyncpa [#allocation4 + $0x1], 0  ;;  %s1571_s18 = smov 0   ;;  %s1573_s19 = smov 0  }
   0x5   :  { %s1575_s20 = smov 0   ;;  %s1577_s21 = smov 0  }
   0x6 LB: > { %s1592_s22 = sadd.s32 4294967295, %s1531_s21   ;;  %s1207_s23 = sadd.s32 4294967294, %s1531_s21   ;;  %s1531_s21 = sphi %s1577_s21, %s2125_s21   ;;  %s1527_s20 = sphi %s1575_s20, %s2124_s20   ;;  %s1523_s19 = sphi %s1573_s19, %s2123_s19   ;;  %s1519_s18 = sphi %s1571_s18, %s2122_s18  }
   0x7   : > { %p42_p0 = scmp.ne.s32.totalorder %s1523_s19, %s1519_s18  ;;  %p43_p1 = scmp.eq.s32.totalorder %s1592_s22, 0 }
   0x8   : > { %p150_p2 = scmp.eq.s32.totalorder %s1592_s22, 1  ;;  %p156_p3 = scmp.eq.s32.totalorder %s1207_s23, 1 }
   0x9   : > { %p1601_p4 = por %p43_p1, %p42_p0  ;;  %p1208_p5 = scmp.ge.s32.totalorder %s1531_s21, 1 }
   0xa   : > { %p1606_p6 = por %p156_p3, %p42_p0  ;;  %p163_p7 = scmp.lt.s32.totalorder %s1531_s21, 3 }
   0xb   : > { %s174_s28 = sshll.u32 %s2103_s1, 4  ;;  %s1533_s30 = smov [#allocation5]   ;;  %s175_s28 = int_to_ptr.hbm [resolvable:$true] %s174_s28 }
   0xc   : > { %p1614_p8 = pnand %p1208_p5, %p163_p7  ;;  %s176_s6 = sshll.u32 %s1533_s30, 4  ;;  %s177_s6 = int_to_ptr.vmem [resolvable:$true] %s176_s6 }
   0xd   : > { %s188_s9 = sshll.u32 %s2104_s2, 4  ;;  %s2108_s10 = smov 128   ;;  %s189_s9 = int_to_ptr.hbm [resolvable:$true] %s188_s9 }
   0xe   : > { %p1247_p9 = pneg %p1614_p8  ;;  %s1535_s11 = smov 8  }
   0xf   : > { %s1536_s12 = smov [#allocation7]   ;;  %s1537_s14 = smov 16  }
  0x10   : > { %p1248_p10 = pnand %p1247_p9, %p43_p1  ;;  %s190_s13 = sshll.u32 %s1536_s12, 4  ;;  %s191_s13 = int_to_ptr.vmem [resolvable:$true] %s190_s13 }
  0x11   : > { %s1538_s15 = smov 1   ;;  %s1630_s16 = sadd.s32 1, %s1531_s21  }
  0x12   : > { %1250 = dma.hbm_to_vmem [thread:$0]  (!%p1248_p10), %s175_s28, 6144, %s177_s6, [#allocation6], %s2108_s10, %s2108_s10, %s1535_s11  }
  0x13   : > { %1253 = dma.hbm_to_vmem [thread:$0]  (!%p1248_p10), %s189_s9, 48, %s191_s13, [#allocation6], %s1537_s14, %s1537_s14, %s1538_s15  }
  0x14   : > { %s26_s17 = ssub.s32 %s1531_s21, %s1630_s16  ;;  %s29_s23 = sadd.s32 1, %s1527_s20 }
  0x15   : > { %p27_p12 = scmp.eq.s32.totalorder %s26_s17, 0  ;;  %p36_p13 = scmp.ne.s32.totalorder %s1527_s20, %s1523_s19 }
  0x16   : > { %p37_p0 = scmp.eq.s32.totalorder %s1531_s21, 0  ;;  %p1264_p7 = scmp.lt.s32.totalorder %s1531_s21, 2 }
  0x17   : > { %s1639_s26 = scalar_select %p27_p12, %s1527_s20, %s29_s23  }
  0x18   : > { %p38_p3 = por %p37_p0, %p36_p13  ;;  %p1643_p5 = por %p150_p2, %p36_p13 }
  0x19   : > { %s210_s28 = sand.u32 1, %s1527_s20   ;;  %s1225_s6 = sshll.u32 %s1531_s21, 6 }
  0x1a   : > { %s1212_s30 = sshll.u32 %s210_s28, 6  ;;  %s219_s9 = scalar_lea.hbm %s2102_s0, %s1225_s6 }
  0x1b   : > { %s214_s12 = scalar_lea.vmem [#allocation2], %s1212_s30  ;;  %s220_s14 = sshll.u32 %s219_s9, 4  ;;  %s221_s14 = int_to_ptr.hbm [resolvable:$true] %s220_s14 }
  0x1c   : > { %s222_s13 = sshll.u32 %s214_s12, 4  ;;  %p1653_p9 = pnand %p1264_p7, %p38_p3  ;;  %s223_s13 = int_to_ptr.vmem [resolvable:$true] %s222_s13 }
  0x1d   : > { %s211_s17 = scalar_lea.sflag [#allocation3], %s210_s28  ;;  %s1431_s23 = sshra.s32 %s221_s14, 4  ;;  %s1432_s23 = int_to_ptr.hbm [resolvable:$true] %s1431_s23 }
  0x1e   : > { %s1433_s10 = scalar_lea.hbm %s1432_s23, 64  ;;  %p1435_p10 = pneg %p1653_p9 }
  0x1f   : > { %p1434_p2 = scmp.ne.s32.totalorder %s1432_s23, %s1433_s10  ;;  %s1438_s7 = scalar_lea.hbm %s2102_s0, 128 }
  0x20   : > { %p1439_p0 = scmp.lt.s32.totalorder %s1432_s23, %s2102_s0  ;;  %p1440_p3 = scmp.lt.s32.totalorder %s1438_s7, %s1433_s10 }
  0x21   : > { %p1436_p12 = pnand %p1435_p10, %p1434_p2 }
  0x22   : > { %p1441_p7 = por %p1440_p3, %p1439_p0 }
  0x23   : > { %p1437_p13 = pneg %p1436_p12 }
  0x25   : > { %p1442_p11 = pnand %p1441_p7, %p1437_p13 }
  0x27   : > { %1445 = shalt.err (!%p1442_p11)
}
  0x28   : > { %s2114_s28 = smov 128   ;;  %234 = sbr.rel (%p1614_p8) target bundleno = 1010 (0x3f2), region = 40 }
  0x29   : > { %1257 = dma.hbm_to_vmem [thread:$0]  (!%p1653_p9), %s221_s14, 1024, %s223_s13, %s211_s17, %s2114_s28, %s2114_s28, %s1535_s11  }
  0x2a   : > { %s1673_s12 = sand.u32 (!%p1614_p8), 1, %s1523_s19  }
  0x2b   : > { %s1216_s10 = sshll.u32 (!%p1614_p8), %s1673_s12, 6  ;;  %s237_s23 = scalar_lea.sflag (!%p1614_p8), [#allocation3], %s1673_s12 }
  0x2c   : > { %s1679_s6 = scalar_lea.vmem (!%p1614_p8), [#allocation2], %s1216_s10 }
  0x2d   : > { %1506 = dma.done.wait (%p1601_p4), %s237_s23, 1024  }
  0x2e   : > { %1508 = vsyncadd (%p1601_p4), %s237_s23, 4294966272 }
  0x2f   : > { %1510 = dma.done.wait (%p43_p1), [#allocation6], 6192  }
  0x30   : > { %1512 = vsyncadd (%p43_p1), [#allocation6], 4294961104  ;;  %v310_v0 = vld [vmem:[#allocation5 + $0x70] sm:$0xff]  ;;  %v311_v1 = vld [vmem:[#allocation5 + $0x78] sm:$0xff]  ;;  %s2013_s14 = scalar_lea.vmem [#allocation8], %s1216_s10  ;;  %s1226_s8 = sshll.u32 %s1592_s22, 6 }
  0x31   : > { %v308_v2 = vld [vmem:[#allocation5 + $0x60] sm:$0xff]  ;;  %v319_v3 = vpack.c.bf16 %v311_v1, %v310_v0  ;;  %v309_v4 = vld [vmem:[#allocation5 + $0x68] sm:$0xff]  ;;  %v306_v6 = vld [vmem:[#allocation5 + $0x50] sm:$0xff]  ;;  %s1111_s10 = scalar_lea.hbm %s2107_s5, %s1226_s8  ;;  %s1112_s22 = sshll.u32 %s2013_s14, 4  ;;  %s1113_s22 = int_to_ptr.vmem [resolvable:$true] %s1112_s22 }
  0x32   : > { %v318_v5 = vpack.c.bf16 %v309_v4, %v308_v2  ;;  %v307_v7 = vld [vmem:[#allocation5 + $0x58] sm:$0xff]  ;;  %v304_v8 = vld [vmem:[#allocation5 + $0x40] sm:$0xff]  ;;  %v305_v10 = vld [vmem:[#allocation5 + $0x48] sm:$0xff]  ;;  %s1114_s23 = sshll.u32 %s1111_s10, 4  ;;  %s1100_s24 = scalar_lea.sflag [#allocation4], %s1673_s12  ;;  %s1115_s23 = int_to_ptr.hbm [resolvable:$true] %s1114_s23 }
  0x33   : > { %328 = vmatpush.bf16.msra.mxu0 %v319_v3  ;;  %1227 = vmatpush.bf16.msra.mxu3 %v319_v3  ;;  %v317_v9 = vpack.c.bf16 %v307_v7, %v306_v6  ;;  %v316_v11 = vpack.c.bf16 %v305_v10, %v304_v8  ;;  %v302_v12 = vld [vmem:[#allocation5 + $0x30] sm:$0xff]  ;;  %v303_v13 = vld [vmem:[#allocation5 + $0x38] sm:$0xff]  ;;  %v300_v15 = vld [vmem:[#allocation5 + $0x20] sm:$0xff]  ;;  %s1475_s29 = sshra.s32 %s1115_s23, 4  ;;  %s1481_s17 = scalar_lea.hbm %s2107_s5, 128  ;;  %s1476_s29 = int_to_ptr.hbm [resolvable:$true] %s1475_s29 }
  0x34   : > { %v315_v14 = vpack.c.bf16 %v303_v13, %v302_v12  ;;  %v301_v16 = vld [vmem:[#allocation5 + $0x28] sm:$0xff]  ;;  %v298_v18 = vld [vmem:[#allocation5 + $0x10] sm:$0xff]  ;;  %v299_v19 = vld [vmem:[#allocation5 + $0x18] sm:$0xff]  ;;  %s1477_s11 = scalar_lea.hbm %s1476_s29, 64  ;;  %p1482_p11 = scmp.lt.s32.totalorder %s1476_s29, %s2107_s5 }
  0x35   : > { %v314_v17 = vpack.c.bf16 %v301_v16, %v300_v15  ;;  %v313_v20 = vpack.c.bf16 %v299_v19, %v298_v18  ;;  %v296_v21 = vld [vmem:[#allocation5] sm:$0xff]  ;;  %v297_v22 = vld [vmem:[#allocation5 + $0x8] sm:$0xff]  ;;  %v282_v26 = vld [vmem:[%s1679_s6 + $0x10] sm:$0xff]  ;;  %p1478_p1 = scmp.ne.s32.totalorder %s1476_s29, %s1477_s11  ;;  %p1483_p9 = scmp.lt.s32.totalorder %s1481_s17, %s1477_s11 }
  0x36   : > { %v280_v23 = vld [vmem:[%s1679_s6] sm:$0xff]  ;;  %v312_v24 = vpack.c.bf16 %v297_v22, %v296_v21  ;;  %v281_v25 = vld [vmem:[%s1679_s6 + $0x8] sm:$0xff]  ;;  %v283_v27 = vld [vmem:[%s1679_s6 + $0x18] sm:$0xff] }
  0x37   : > { %329 = vmatpush.bf16.msra.mxu0 %v318_v5  ;;  %1228 = vmatpush.bf16.msra.mxu3 %v318_v5  ;;  %v321_v28 = vpack.c.bf16 %v281_v25, %v280_v23  ;;  %v322_v29 = vpack.c.bf16 %v283_v27, %v282_v26  ;;  %v284_v30 = vld [vmem:[%s1679_s6 + $0x20] sm:$0xff]  ;;  %v285_v31 = vld [vmem:[%s1679_s6 + $0x28] sm:$0xff]  ;;  %v286_v33 = vld [vmem:[%s1679_s6 + $0x30] sm:$0xff]  ;;  %p1479_p4 = pnand %p1478_p1, %p1643_p5  ;;  %p1484_p2 = por %p1483_p9, %p1482_p11 }
  0x38   : > { %v323_v32 = vpack.c.bf16 %v285_v31, %v284_v30  ;;  %v287_v34 = vld [vmem:[%s1679_s6 + $0x38] sm:$0xff]  ;;  %v1308_v36 = vld [vmem:[#allocation7] ss:$0 sm:$0xff]  ;;  %v572_v61 = vld [vmem:[#allocation5 + $0xf0] sm:$0xff] }
  0x39   : > { %v324_v35 = vpack.c.bf16 %v287_v34, %v286_v33  ;;  %v573_v62 = vld [vmem:[#allocation5 + $0xf8] sm:$0xff]  ;;  %v570_v0 = vld [vmem:[#allocation5 + $0xe0] sm:$0xff]  ;;  %v571_v1 = vld [vmem:[#allocation5 + $0xe8] sm:$0xff]  ;;  %p1480_p8 = pneg %p1479_p4 }
  0x3a   : > { %v581_v63 = vpack.c.bf16 %v573_v62, %v572_v61  ;;  %v580_v2 = vpack.c.bf16 %v571_v1, %v570_v0  ;;  %v568_v3 = vld [vmem:[#allocation5 + $0xd0] sm:$0xff]  ;;  %v569_v4 = vld [vmem:[#allocation5 + $0xd8] sm:$0xff]  ;;  %v566_v6 = vld [vmem:[#allocation5 + $0xc0] sm:$0xff] }
  0x3b   : > { %330 = vmatpush.bf16.msra.mxu0 %v317_v9  ;;  %1229 = vmatpush.bf16.msra.mxu3 %v317_v9  ;;  %v579_v5 = vpack.c.bf16 %v569_v4, %v568_v3  ;;  %v567_v7 = vld [vmem:[#allocation5 + $0xc8] sm:$0xff]  ;;  %v564_v9 = vld [vmem:[#allocation5 + $0xb0] sm:$0xff]  ;;  %v565_v10 = vld [vmem:[#allocation5 + $0xb8] sm:$0xff]  ;;  %p1485_p10 = pnand %p1484_p2, %p1480_p8 }
  0x3c   : > { %591 = vmatpush.bf16.msra.mxu1 %v581_v63  ;;  %v578_v8 = vpack.c.bf16 %v567_v7, %v566_v6  ;;  %v562_v13 = vld [vmem:[#allocation5 + $0xa0] sm:$0xff]  ;;  %v561_v21 = vld [vmem:[#allocation5 + $0x98] sm:$0xff] }
  0x3d   : > { %v558_v27 = vld [vmem:[#allocation5 + $0x80] sm:$0xff] }
  0x3f   : > { %331 = vmatpush.bf16.msra.mxu0 %v316_v11  ;;  %1230 = vmatpush.bf16.msra.mxu3 %v316_v11  ;;  %v577_v11 = vpack.c.bf16 %v565_v10, %v564_v9 }
  0x40   : > { %592 = vmatpush.bf16.msra.mxu1 %v580_v2 }
  0x43   : > { %332 = vmatpush.bf16.msra.mxu0 %v315_v14  ;;  %1231 = vmatpush.bf16.msra.mxu3 %v315_v14  ;;  %v563_v14 = vld [vmem:[#allocation5 + $0xa8] sm:$0xff] }
  0x44   : > { %593 = vmatpush.bf16.msra.mxu1 %v579_v5  ;;  %v576_v16 = vpack.c.bf16 %v563_v14, %v562_v13 }
  0x47   : > { %333 = vmatpush.bf16.msra.mxu0 %v314_v17  ;;  %1232 = vmatpush.bf16.msra.mxu3 %v314_v17 }
  0x48   : > { %594 = vmatpush.bf16.msra.mxu1 %v578_v8 }
  0x4b   : > { %334 = vmatpush.bf16.msra.mxu0 %v313_v20  ;;  %1233 = vmatpush.bf16.msra.mxu3 %v313_v20  ;;  %v560_v20 = vld [vmem:[#allocation5 + $0x90] sm:$0xff] }
  0x4c   : > { %595 = vmatpush.bf16.msra.mxu1 %v577_v11  ;;  %v575_v23 = vpack.c.bf16 %v561_v21, %v560_v20 }
  0x4f   : > { %335 = vmatpush.bf16.msra.mxu0 %v312_v24  ;;  %1234 = vmatpush.bf16.msra.mxu3 %v312_v24 }
  0x50   : > { %596 = vmatpush.bf16.msra.mxu1 %v576_v16 }
  0x52   : > { %336 = vmatmul.bf16.vlgmr.msra.gmra.mxu0 %v321_v28  ;;  %341 = vmatmul.bf16.vlgmr.msra.gmra.mxu3 %v322_v29  ;;  %v559_v28 = vld [vmem:[#allocation5 + $0x88] sm:$0xff] }
  0x53   : > { %v574_v31 = vpack.c.bf16 %v559_v28, %v558_v27 }
  0x54   : > { %597 = vmatpush.bf16.msra.mxu1 %v575_v23 }
  0x58   : > { %598 = vmatpush.bf16.msra.mxu1 %v574_v31 }
  0x62   : > { %346 = vmatmul.bf16.gmra.mxu3 %v323_v32 }
  0x72   : > { %351 = vmatmul.bf16.gmra.mxu3 %v324_v35 }
  0xcf   : > { %v337_v37 = vpop.f32.mrf.mxu0 }
  0xd0   : > { %v1697_v38 = vadd.f32 %v1308_v36, %v337_v37 }
  0xd2   : > { %357 = vadd.xlane.f32.xlu0 %v1697_v38  ;;  %v373_v39 = vmul.f32 %v1697_v38, %v1697_v38 }
  0xd4   : > { %381 = vadd.xlane.f32.xlu1 %v373_v39 }
  0xd5   : > { %v342_v40 = vpop.f32.mrf.mxu3 }
  0xd6   : > { %v1702_v41 = vadd.f32 %v1308_v36, %v342_v40 }
  0xd7   : > { %v339_v42 = vpop.f32.mrf.mxu0 }
  0xd8   : > { %v1704_v43 = vadd.f32 %v1308_v36, %v339_v42  ;;  %361 = vadd.xlane.f32.xlu2 %v1702_v41  ;;  %v375_v47 = vmul.f32 %v1702_v41, %v1702_v41 }
  0xda   : > { %359 = vadd.xlane.f32.xlu0 %v1704_v43  ;;  %v374_v44 = vmul.f32 %v1704_v43, %v1704_v43 }
  0xdc   : > { %383 = vadd.xlane.f32.xlu1 %v374_v44 }
  0xdd   : > { %v344_v45 = vpop.f32.mrf.mxu3 }
  0xde   : > { %v1710_v46 = vadd.f32 %v1308_v36, %v344_v45 }
  0xe0   : > { %363 = vadd.xlane.f32.xlu2 %v1710_v46  ;;  %v376_v48 = vmul.f32 %v1710_v46, %v1710_v46 }
  0xe2   : > { %385 = vadd.xlane.f32.xlu0 %v375_v47 }
  0xe4   : > { %387 = vadd.xlane.f32.xlu1 %v376_v48 }
  0xe5   : > { %v347_v49 = vpop.f32.mrf.mxu3 }
  0xe6   : > { %v1717_v50 = vadd.f32 %v1308_v36, %v347_v49 }
  0xe8   : > { %365 = vadd.xlane.f32.xlu2 %v1717_v50  ;;  %v377_v51 = vmul.f32 %v1717_v50, %v1717_v50 }
  0xec   : > { %389 = vadd.xlane.f32.xlu1 %v377_v51 }
  0xed   : > { %v349_v52 = vpop.f32.mrf.mxu3 }
  0xee   : > { %v1722_v53 = vadd.f32 %v1308_v36, %v349_v52 }
  0xf0   : > { %367 = vadd.xlane.f32.xlu0 %v1722_v53  ;;  %v378_v54 = vmul.f32 %v1722_v53, %v1722_v53 }
  0xf2   : > { %391 = vadd.xlane.f32.xlu2 %v378_v54 }
  0xf5   : > { %v352_v55 = vpop.f32.mrf.mxu3 }
  0xf6   : > { %v1727_v56 = vadd.f32 %v1308_v36, %v352_v55 }
  0xf8   : > { %369 = vadd.xlane.f32.xlu0 %v1727_v56  ;;  %v379_v57 = vmul.f32 %v1727_v56, %v1727_v56 }
  0xfa   : > { %393 = vadd.xlane.f32.xlu2 %v379_v57 }
  0xfd   : > { %v354_v58 = vpop.f32.mrf.mxu3 }
  0xfe   : > { %v1732_v59 = vadd.f32 %v1308_v36, %v354_v58 }
 0x100   : > { %371 = vadd.xlane.f32.xlu1 %v1732_v59  ;;  %v380_v60 = vmul.f32 %v1732_v59, %v1732_v59 }
 0x102   : > { %395 = vadd.xlane.f32.xlu0 %v380_v60 }
 0x145   : > { %v358_v12 = vpop.xlane.xlu0 %357 }
 0x146   : > { %v1737_v15 = vmul.f32 0.0078125, %v358_v12 }
 0x147   : > { %v382_v17 = vpop.xlane.xlu1 %381 }
 0x148   : > { %v413_v18 = vmul.f32 %v1737_v15, %v1737_v15  ;;  %v405_v19 = vmul.f32 0.0078125, %v382_v17  ;;  %v517_v12 = vsub.f32 %v1697_v38, %v1737_v15  ;;  %v1784_v38 = vld [vmem:[%s2105_s3] ss:$0 sm:$0xff] }
 0x14a   : > { %v421_v22 = vsub.f32 %v405_v19, %v413_v18 }
 0x14b   : > { %v362_v24 = vpop.xlane.xlu2 %361 }
 0x14c   : > { %v429_v25 = vadd.f32 1e-05, %v421_v22  ;;  %v1745_v34 = vmul.f32 0.0078125, %v362_v24 }
 0x14d   : > { %v360_v26 = vpop.xlane.xlu0 %359 }
 0x14e   : > { %1313 = vrsqrt.f32 %v429_v25  ;;  %v1741_v29 = vmul.f32 0.0078125, %v360_v26  ;;  %v415_v39 = vmul.f32 %v1745_v34, %v1745_v34  ;;  %vm443_vm1 = vweird.f32 %v429_v25 }
 0x14f   : > { %v384_v30 = vpop.xlane.xlu1 %383 }
 0x150   : > { %v406_v32 = vmul.f32 0.0078125, %v384_v30  ;;  %v414_v33 = vmul.f32 %v1741_v29, %v1741_v29 }
 0x152   : > { %v422_v35 = vsub.f32 %v406_v32, %v414_v33  ;;  %v1794_v33 = vld [vmem:[%s2106_s4] ss:$0 sm:$0xff] }
 0x153   : > { %v364_v36 = vpop.xlane.xlu2 %363 }
 0x154   : > { %v1314_v37 = vpop.eup %1313  ;;  %v1749_v40 = vmul.f32 0.0078125, %v364_v36  ;;  %v430_v44 = vadd.f32 1e-05, %v422_v35 }
 0x155   : > { %v438_v42 = vmul.f32 %v1314_v37, %v429_v25  ;;  %v386_v45 = vpop.xlane.xlu0 %385  ;;  %vm444_vm0 = vweird.f32 %v1314_v37  ;;  %v518_v25 = vsub.f32 %v1704_v43, %v1741_v29 }
 0x156   : > { %v416_v47 = vmul.f32 %v1749_v40, %v1749_v40  ;;  %v407_v48 = vmul.f32 0.0078125, %v386_v45  ;;  %1315 = vrsqrt.f32 %v430_v44  ;;  %vm1763_vm2 = vmor %vm443_vm1, %vm444_vm0  ;;  %vm453_vm4 = vweird.f32 %v430_v44 }
 0x157   : > { %v439_v49 = vmul.f32 %v1314_v37, %v438_v42  ;;  %v388_v51 = vpop.xlane.xlu1 %387 }
 0x158   : > { %v423_v52 = vsub.f32 %v407_v48, %v415_v39  ;;  %v408_v54 = vmul.f32 0.0078125, %v388_v51 }
 0x159   : > { %v440_v55 = vmul.f32 0.5, %v439_v49 }
 0x15a   : > { %v1753_v57 = vadd.f32 1e-05, %v423_v52  ;;  %v424_v58 = vsub.f32 %v408_v54, %v416_v47 }
 0x15b   : > { %v441_v60 = vsub.f32 1.5, %v440_v55  ;;  %v366_v61 = vpop.xlane.xlu2 %365 }
 0x15c   : > { %1317 = vrsqrt.f32 %v1753_v57  ;;  %v1756_v62 = vadd.f32 1e-05, %v424_v58  ;;  %v1316_v63 = vpop.eup %1315  ;;  %v1758_v0 = vmul.f32 0.0078125, %v366_v61  ;;  %vm463_vm10 = vweird.f32 %v1753_v57 }
 0x15d   : > { %v442_v1 = vmul.f32 %v1314_v37, %v441_v60  ;;  %v448_v2 = vmul.f32 %v1316_v63, %v430_v44  ;;  %vm454_vm3 = vweird.f32 %v1316_v63 }
 0x15e   : > { %1319 = vrsqrt.f32 %v1756_v62  ;;  %v417_v3 = vmul.f32 %v1758_v0, %v1758_v0  ;;  %vm455_vm5 = vmor %vm453_vm4, %vm454_vm3  ;;  %vm473_vm6 = vweird.f32 %v1756_v62 }
 0x15f   : > { %v390_v4 = vpop.xlane.xlu1 %389  ;;  %v449_v5 = vmul.f32 %v1316_v63, %v448_v2  ;;  %v446_v11 = vsel %vm1763_vm2, %v1314_v37, %v442_v1 }
 0x160   : > { %v409_v6 = vmul.f32 0.0078125, %v390_v4  ;;  %v525_v15 = vmul.f32 %v517_v12, %v446_v11 }
 0x161   : > { %v450_v9 = vmul.f32 0.5, %v449_v5 }
 0x162   : > { %v1767_v8 = vpop.eup %1317  ;;  %v425_v10 = vsub.f32 %v409_v6, %v417_v3  ;;  %v533_v36 = vmul.f32 %v1784_v38, %v525_v15 }
 0x163   : > { %v458_v13 = vmul.f32 %v1767_v8, %v1753_v57  ;;  %v368_v14 = vpop.xlane.xlu0 %367  ;;  %v451_v17 = vsub.f32 1.5, %v450_v9  ;;  %vm464_vm8 = vweird.f32 %v1767_v8 }
 0x164   : > { %v1320_v16 = vpop.eup %1319  ;;  %v1775_v18 = vadd.f32 1e-05, %v425_v10  ;;  %v1777_v19 = vmul.f32 0.0078125, %v368_v14  ;;  %v541_v49 = vadd.f32 %v1794_v33, %v533_v36  ;;  %vm1822_vm11 = vmor %vm463_vm10, %vm464_vm8 }
 0x165   : > { %v459_v20 = vmul.f32 %v1767_v8, %v458_v13  ;;  %v468_v21 = vmul.f32 %v1320_v16, %v1756_v62  ;;  %v392_v22 = vpop.xlane.xlu2 %391  ;;  %v452_v23 = vmul.f32 %v1316_v63, %v451_v17  ;;  %vm474_vm7 = vweird.f32 %v1320_v16 }
 0x166   : > { %1321 = vrsqrt.f32 %v1775_v18  ;;  %v418_v24 = vmul.f32 %v1777_v19, %v1777_v19  ;;  %v410_v28 = vmul.f32 0.0078125, %v392_v22  ;;  %vm1810_vm9 = vmor %vm473_vm6, %vm474_vm7  ;;  %v549_v2 = vmax.f32 %v541_v49, 0.0 }
 0x167   : > { %v460_v26 = vmul.f32 0.5, %v459_v20  ;;  %v469_v27 = vmul.f32 %v1320_v16, %v468_v21  ;;  %v456_v30 = vsel %vm455_vm5, %v1316_v63, %v452_v23  ;;  %v520_v63 = vsub.f32 %v1710_v46, %v1749_v40 }
 0x168   : > { %v426_v32 = vsub.f32 %v410_v28, %v418_v24  ;;  %v526_v35 = vmul.f32 %v518_v25, %v456_v30  ;;  %v519_v46 = vsub.f32 %v1702_v41, %v1745_v34  ;;  %vm483_vm13 = vweird.f32 %v1775_v18 }
 0x169   : > { %v470_v31 = vmul.f32 0.5, %v469_v27  ;;  %v461_v37 = vsub.f32 1.5, %v460_v26 }
 0x16a   : > { %v434_v42 = vadd.f32 1e-05, %v426_v32  ;;  %v534_v43 = vmul.f32 %v1784_v38, %v526_v35  ;;  %v522_v35 = vsub.f32 %v1722_v53, %v1777_v19 }
 0x16b   : > { %v471_v39 = vsub.f32 1.5, %v470_v31  ;;  %v370_v44 = vpop.xlane.xlu0 %369  ;;  %v462_v51 = vmul.f32 %v1767_v8, %v461_v37 }
 0x16c   : > { %v1798_v29 = vpop.eup %1321  ;;  %v1801_v45 = vmul.f32 0.0078125, %v370_v44  ;;  %1323 = vrsqrt.f32 %v434_v42  ;;  %v542_v60 = vadd.f32 %v1794_v33, %v534_v43  ;;  %vm493_vm15 = vweird.f32 %v434_v42 }
 0x16d   : > { %v472_v47 = vmul.f32 %v1320_v16, %v471_v39  ;;  %v394_v48 = vpop.xlane.xlu2 %393  ;;  %v478_v52 = vmul.f32 %v1798_v29, %v1775_v18  ;;  %v466_v57 = vsel %vm1822_vm11, %v1767_v8, %v462_v51  ;;  %vm484_vm14 = vweird.f32 %v1798_v29 }
 0x16e   : > { %v419_v54 = vmul.f32 %v1801_v45, %v1801_v45  ;;  %v411_v55 = vmul.f32 0.0078125, %v394_v48  ;;  %v550_v3 = vmax.f32 %v542_v60, 0.0  ;;  %v527_v13 = vmul.f32 %v519_v46, %v466_v57  ;;  %vm485_vm1 = vmor %vm483_vm13, %vm484_vm14 }
 0x16f   : > { %v476_v62 = vsel %vm1810_vm9, %v1320_v16, %v472_v47  ;;  %v479_v4 = vmul.f32 %v1798_v29, %v478_v52  ;;  %v521_v44 = vsub.f32 %v1717_v50, %v1758_v0 }
 0x170   : > { %v427_v61 = vsub.f32 %v411_v55, %v419_v54  ;;  %v584_v40 = vpack.c.bf16 %v550_v3, %v549_v2  ;;  %v528_v9 = vmul.f32 %v520_v63, %v476_v62  ;;  %v535_v21 = vmul.f32 %v1784_v38, %v527_v13 }
 0x171   : > { %v480_v14 = vmul.f32 0.5, %v479_v4  ;;  %v523_v2 = vsub.f32 %v1727_v56, %v1801_v45 }
 0x172   : > { %v1827_v5 = vadd.f32 1e-05, %v427_v61  ;;  %v1324_v6 = vpop.eup %1323  ;;  %599 = vmatmul.bf16.vlgmr.msra.gmra.mxu1 %v584_v40  ;;  %v536_v20 = vmul.f32 %v1784_v38, %v528_v9  ;;  %v543_v27 = vadd.f32 %v1794_v33, %v535_v21 }
 0x173   : > { %v372_v7 = vpop.xlane.xlu1 %371  ;;  %v488_v10 = vmul.f32 %v1324_v6, %v434_v42  ;;  %v481_v22 = vsub.f32 1.5, %v480_v14  ;;  %vm494_vm12 = vweird.f32 %v1324_v6 }
 0x174   : > { %1325 = vrsqrt.f32 %v1827_v5  ;;  %v1835_v11 = vmul.f32 0.0078125, %v372_v7  ;;  %v544_v25 = vadd.f32 %v1794_v33, %v536_v20  ;;  %vm495_vm0 = vmor %vm493_vm15, %vm494_vm12  ;;  %v551_v36 = vmax.f32 %v543_v27, 0.0 }
 0x175   : > { %v396_v12 = vpop.xlane.xlu0 %395  ;;  %v489_v16 = vmul.f32 %v1324_v6, %v488_v10  ;;  %v482_v28 = vmul.f32 %v1798_v29, %v481_v22  ;;  %vm503_vm3 = vweird.f32 %v1827_v5  ;;  %v1311_v10 = vld [vmem:[#allocation7 + $0x1] ss:$0 sm:$0xff] }
 0x176   : > { %v412_v17 = vmul.f32 0.0078125, %v396_v12  ;;  %v420_v8 = vmul.f32 %v1835_v11, %v1835_v11  ;;  %v552_v31 = vmax.f32 %v544_v25, 0.0  ;;  %v524_v62 = vsub.f32 %v1732_v59, %v1835_v11 }
 0x177   : > { %v490_v41 = vmul.f32 0.5, %v489_v16  ;;  %v486_v18 = vsel %vm485_vm1, %v1798_v29, %v482_v28 }
 0x178   : > { %v428_v34 = vsub.f32 %v412_v17, %v420_v8  ;;  %v585_v43 = vpack.c.bf16 %v552_v31, %v551_v36  ;;  %v529_v48 = vmul.f32 %v521_v44, %v486_v18  ;;  %v836_v36 = vld [vmem:[#allocation5 + $0x178] sm:$0xff]  ;;  %v833_v18 = vld [vmem:[#allocation5 + $0x160] sm:$0xff] }
 0x179   : > { %v491_v15 = vsub.f32 1.5, %v490_v41 }
 0x17a   : > { %v1326_v23 = vpop.eup %1325  ;;  %v436_v24 = vadd.f32 1e-05, %v428_v34  ;;  %v537_v53 = vmul.f32 %v1784_v38, %v529_v48  ;;  %v829_v48 = vld [vmem:[#allocation5 + $0x140] sm:$0xff] }
 0x17b   : > { %v492_v26 = vmul.f32 %v1324_v6, %v491_v15  ;;  %v498_v30 = vmul.f32 %v1326_v23, %v1827_v5  ;;  %vm504_vm4 = vweird.f32 %v1326_v23 }
 0x17c   : > { %1327 = vrsqrt.f32 %v436_v24  ;;  %v545_v50 = vadd.f32 %v1794_v33, %v537_v53  ;;  %vm513_vm5 = vweird.f32 %v436_v24  ;;  %vm505_vm7 = vmor %vm503_vm3, %vm504_vm4 }
 0x17d   : > { %v496_v32 = vsel %vm495_vm0, %v1324_v6, %v492_v26  ;;  %v499_v37 = vmul.f32 %v1326_v23, %v498_v30 }
 0x17e   : > { %v530_v47 = vmul.f32 %v522_v35, %v496_v32  ;;  %v553_v63 = vmax.f32 %v545_v50, 0.0  ;;  %v835_v35 = vld [vmem:[#allocation5 + $0x170] sm:$0xff] }
 0x17f   : > { %v500_v49 = vmul.f32 0.5, %v499_v37  ;;  %v844_v37 = vpack.c.bf16 %v836_v36, %v835_v35 }
 0x180   : > { %v538_v52 = vmul.f32 %v1784_v38, %v530_v47  ;;  %v832_v47 = vld [vmem:[#allocation5 + $0x158] sm:$0xff] }
 0x181   : > { %v501_v19 = vsub.f32 1.5, %v500_v49  ;;  %854 = vmatpush.bf16.msra.mxu2 %v844_v37  ;;  %v830_v49 = vld [vmem:[#allocation5 + $0x148] sm:$0xff] }
 0x182   : > { %v1328_v39 = vpop.eup %1327  ;;  %604 = vmatmul.bf16.gmra.mxu1 %v585_v43  ;;  %v546_v29 = vadd.f32 %v1794_v33, %v538_v52  ;;  %v831_v43 = vld [vmem:[#allocation5 + $0x150] sm:$0xff] }
 0x183   : > { %v508_v42 = vmul.f32 %v1328_v39, %v436_v24  ;;  %vm514_vm2 = vweird.f32 %v1328_v39  ;;  %v502_v0 = vmul.f32 %v1326_v23, %v501_v19  ;;  %v827_v52 = vld [vmem:[#allocation5 + $0x130] sm:$0xff]  ;;  %v825_v19 = vld [vmem:[#allocation5 + $0x120] sm:$0xff] }
 0x184   : > { %vm515_vm6 = vmor %vm513_vm5, %vm514_vm2  ;;  %v554_v60 = vmax.f32 %v546_v29, 0.0 }
 0x185   : > { %v509_v51 = vmul.f32 %v1328_v39, %v508_v42  ;;  %v506_v1 = vsel %vm505_vm7, %v1326_v23, %v502_v0  ;;  %v842_v42 = vpack.c.bf16 %v832_v47, %v831_v43 }
 0x186   : > { %v586_v3 = vpack.c.bf16 %v554_v60, %v553_v63  ;;  %v531_v57 = vmul.f32 %v523_v2, %v506_v1  ;;  %v824_v63 = vld [vmem:[#allocation5 + $0x118] sm:$0xff] }
 0x187   : > { %v510_v54 = vmul.f32 0.5, %v509_v51  ;;  %v841_v51 = vpack.c.bf16 %v830_v49, %v829_v48 }
 0x188   : > { %v539_v6 = vmul.f32 %v1784_v38, %v531_v57  ;;  %v822_v57 = vld [vmem:[#allocation5 + $0x108] sm:$0xff] }
 0x189   : > { %v511_v55 = vsub.f32 1.5, %v510_v54  ;;  %v828_v54 = vld [vmem:[#allocation5 + $0x138] sm:$0xff] }
 0x18a   : > { %v547_v40 = vadd.f32 %v1794_v33, %v539_v6  ;;  %v840_v53 = vpack.c.bf16 %v828_v54, %v827_v52 }
 0x18b   : > { %v512_v58 = vmul.f32 %v1328_v39, %v511_v55  ;;  %v826_v55 = vld [vmem:[#allocation5 + $0x128] sm:$0xff] }
 0x18c   : > { %v555_v9 = vmax.f32 %v547_v40, 0.0 }
 0x18d   : > { %v516_v61 = vsel %vm515_vm6, %v1328_v39, %v512_v58  ;;  %v834_v39 = vld [vmem:[#allocation5 + $0x168] sm:$0xff]  ;;  %v839_v58 = vpack.c.bf16 %v826_v55, %v825_v19 }
 0x18e   : > { %v532_v4 = vmul.f32 %v524_v62, %v516_v61  ;;  %v843_v44 = vpack.c.bf16 %v834_v39, %v833_v18  ;;  %v823_v62 = vld [vmem:[#allocation5 + $0x110] sm:$0xff] }
 0x18f   : > { %v838_v1 = vpack.c.bf16 %v824_v63, %v823_v62 }
 0x190   : > { %v540_v5 = vmul.f32 %v1784_v38, %v532_v4  ;;  %855 = vmatpush.bf16.msra.mxu2 %v843_v44  ;;  %v821_v4 = vld [vmem:[#allocation5 + $0x100] sm:$0xff] }
 0x191   : > { %v837_v6 = vpack.c.bf16 %v822_v57, %v821_v4 }
 0x192   : > { %609 = vmatmul.bf16.gmra.mxu1 %v586_v3  ;;  %v548_v46 = vadd.f32 %v1794_v33, %v540_v5 }
 0x194   : > { %v556_v7 = vmax.f32 %v548_v46, 0.0  ;;  %856 = vmatpush.bf16.msra.mxu2 %v842_v42 }
 0x196   : > { %v587_v59 = vpack.c.bf16 %v556_v7, %v555_v9 }
 0x198   : > { %857 = vmatpush.bf16.msra.mxu2 %v841_v51 }
 0x19c   : > { %858 = vmatpush.bf16.msra.mxu2 %v840_v53 }
 0x1a0   : > { %859 = vmatpush.bf16.msra.mxu2 %v839_v58 }
 0x1a2   : > { %614 = vmatmul.bf16.gmra.mxu1 %v587_v59 }
 0x1a4   : > { %860 = vmatpush.bf16.msra.mxu2 %v838_v1 }
 0x1a8   : > { %861 = vmatpush.bf16.msra.mxu2 %v837_v6 }
 0x1ef   : > { %v600_v11 = vpop.f32.mrf.mxu1 }
 0x1f0   : > { %v1865_v12 = vadd.f32 %v1311_v10, %v600_v11 }
 0x1f2   : > { %620 = vadd.xlane.f32.xlu1 %v1865_v12  ;;  %v636_v56 = vmul.f32 %v1865_v12, %v1865_v12 }
 0x1f4   : > { %644 = vadd.xlane.f32.xlu0 %v636_v56 }
 0x1f7   : > { %v602_v45 = vpop.f32.mrf.mxu1 }
 0x1f8   : > { %v1870_v13 = vadd.f32 %v1311_v10, %v602_v45 }
 0x1fa   : > { %622 = vadd.xlane.f32.xlu2 %v1870_v13  ;;  %v637_v14 = vmul.f32 %v1870_v13, %v1870_v13 }
 0x1fc   : > { %646 = vadd.xlane.f32.xlu1 %v637_v14 }
 0x1ff   : > { %v605_v16 = vpop.f32.mrf.mxu1 }
 0x200   : > { %v1875_v17 = vadd.f32 %v1311_v10, %v605_v16 }
 0x202   : > { %624 = vadd.xlane.f32.xlu2 %v1875_v17  ;;  %v638_v8 = vmul.f32 %v1875_v17, %v1875_v17 }
 0x204   : > { %648 = vadd.xlane.f32.xlu1 %v638_v8 }
 0x207   : > { %v607_v20 = vpop.f32.mrf.mxu1 }
 0x208   : > { %v1880_v41 = vadd.f32 %v1311_v10, %v607_v20 }
 0x20a   : > { %626 = vadd.xlane.f32.xlu0 %v1880_v41  ;;  %v639_v34 = vmul.f32 %v1880_v41, %v1880_v41 }
 0x20c   : > { %650 = vadd.xlane.f32.xlu2 %v639_v34 }
 0x20f   : > { %v610_v21 = vpop.f32.mrf.mxu1 }
 0x210   : > { %v1885_v22 = vadd.f32 %v1311_v10, %v610_v21 }
 0x212   : > { %628 = vadd.xlane.f32.xlu0 %v1885_v22  ;;  %v640_v15 = vmul.f32 %v1885_v22, %v1885_v22 }
 0x214   : > { %652 = vadd.xlane.f32.xlu2 %v640_v15 }
 0x217   : > { %v612_v23 = vpop.f32.mrf.mxu1 }
 0x218   : > { %v1890_v24 = vadd.f32 %v1311_v10, %v612_v23 }
 0x21a   : > { %630 = vadd.xlane.f32.xlu1 %v1890_v24  ;;  %v641_v25 = vmul.f32 %v1890_v24, %v1890_v24 }
 0x21c   : > { %654 = vadd.xlane.f32.xlu0 %v641_v25 }
 0x21f   : > { %v615_v26 = vpop.f32.mrf.mxu1 }
 0x220   : > { %v1895_v27 = vadd.f32 %v1311_v10, %v615_v26 }
 0x222   : > { %632 = vadd.xlane.f32.xlu1 %v1895_v27  ;;  %v642_v28 = vmul.f32 %v1895_v27, %v1895_v27 }
 0x224   : > { %656 = vadd.xlane.f32.xlu0 %v642_v28 }
 0x227   : > { %v617_v30 = vpop.f32.mrf.mxu1 }
 0x228   : > { %v1900_v31 = vadd.f32 %v1311_v10, %v617_v30 }
 0x22a   : > { %634 = vadd.xlane.f32.xlu2 %v1900_v31  ;;  %v643_v32 = vmul.f32 %v1900_v31, %v1900_v31 }
 0x22c   : > { %658 = vadd.xlane.f32.xlu1 %v643_v32 }
 0x265   : > { %v621_v29 = vpop.xlane.xlu1 %620 }
 0x266   : > { %v660_v50 = vmul.f32 0.0078125, %v621_v29 }
 0x267   : > { %v645_v0 = vpop.xlane.xlu0 %644 }
 0x268   : > { %v676_v60 = vmul.f32 %v660_v50, %v660_v50  ;;  %v668_v61 = vmul.f32 0.0078125, %v645_v0  ;;  %v780_v39 = vsub.f32 %v1865_v12, %v660_v50 }
 0x26a   : > { %v684_v2 = vsub.f32 %v668_v61, %v676_v60 }
 0x26c   : > { %v692_v3 = vadd.f32 1e-05, %v684_v2 }
 0x26d   : > { %v623_v5 = vpop.xlane.xlu2 %622 }
 0x26e   : > { %1329 = vrsqrt.f32 %v692_v3  ;;  %v661_v46 = vmul.f32 0.0078125, %v623_v5  ;;  %vm706_vm9 = vweird.f32 %v692_v3 }
 0x26f   : > { %v647_v40 = vpop.xlane.xlu1 %646 }
 0x270   : > { %v677_v7 = vmul.f32 %v661_v46, %v661_v46  ;;  %v669_v9 = vmul.f32 0.0078125, %v647_v40  ;;  %v781_v55 = vsub.f32 %v1870_v13, %v661_v46 }
 0x272   : > { %v685_v59 = vsub.f32 %v669_v9, %v677_v7 }
 0x274   : > { %v1330_v10 = vpop.eup %1329  ;;  %v693_v11 = vadd.f32 1e-05, %v685_v59 }
 0x275   : > { %v701_v56 = vmul.f32 %v1330_v10, %v692_v3  ;;  %v625_v45 = vpop.xlane.xlu2 %624  ;;  %vm707_vm8 = vweird.f32 %v1330_v10 }
 0x276   : > { %1331 = vrsqrt.f32 %v693_v11  ;;  %v1905_v14 = vmul.f32 0.0078125, %v625_v45  ;;  %vm708_vm10 = vmor %vm706_vm9, %vm707_vm8  ;;  %vm716_vm12 = vweird.f32 %v693_v11 }
 0x277   : > { %v702_v16 = vmul.f32 %v1330_v10, %v701_v56  ;;  %v649_v8 = vpop.xlane.xlu1 %648 }
 0x278   : > { %v678_v20 = vmul.f32 %v1905_v14, %v1905_v14  ;;  %v670_v34 = vmul.f32 0.0078125, %v649_v8  ;;  %v782_v45 = vsub.f32 %v1875_v17, %v1905_v14 }
 0x279   : > { %v703_v21 = vmul.f32 0.5, %v702_v16 }
 0x27a   : > { %v686_v15 = vsub.f32 %v670_v34, %v678_v20 }
 0x27b   : > { %v704_v23 = vsub.f32 1.5, %v703_v21 }
 0x27c   : > { %v1332_v25 = vpop.eup %1331  ;;  %v694_v26 = vadd.f32 1e-05, %v686_v15 }
 0x27d   : > { %v705_v28 = vmul.f32 %v1330_v10, %v704_v23  ;;  %v711_v30 = vmul.f32 %v1332_v25, %v693_v11  ;;  %v627_v32 = vpop.xlane.xlu0 %626  ;;  %vm717_vm11 = vweird.f32 %v1332_v25 }
 0x27e   : > { %1333 = vrsqrt.f32 %v694_v26  ;;  %v1909_v35 = vmul.f32 0.0078125, %v627_v32  ;;  %vm718_vm13 = vmor %vm716_vm12, %vm717_vm11  ;;  %vm726_vm15 = vweird.f32 %v694_v26 }
 0x27f   : > { %v712_v36 = vmul.f32 %v1332_v25, %v711_v30  ;;  %v651_v37 = vpop.xlane.xlu2 %650  ;;  %v709_v18 = vsel %vm708_vm10, %v1330_v10, %v705_v28 }
 0x280   : > { %v679_v44 = vmul.f32 %v1909_v35, %v1909_v35  ;;  %v671_v43 = vmul.f32 0.0078125, %v651_v37  ;;  %v788_v48 = vmul.f32 %v780_v39, %v709_v18  ;;  %v783_v17 = vsub.f32 %v1880_v41, %v1909_v35 }
 0x281   : > { %v713_v47 = vmul.f32 0.5, %v712_v36 }
 0x282   : > { %v687_v42 = vsub.f32 %v671_v43, %v679_v44  ;;  %v796_v29 = vmul.f32 %v1784_v38, %v788_v48 }
 0x283   : > { %v714_v49 = vsub.f32 1.5, %v713_v47 }
 0x284   : > { %v1334_v51 = vpop.eup %1333  ;;  %v695_v52 = vadd.f32 1e-05, %v687_v42  ;;  %v804_v13 = vadd.f32 %v1794_v33, %v796_v29 }
 0x285   : > { %v715_v54 = vmul.f32 %v1332_v25, %v714_v49  ;;  %v721_v53 = vmul.f32 %v1334_v51, %v694_v26  ;;  %v629_v19 = vpop.xlane.xlu0 %628  ;;  %vm727_vm14 = vweird.f32 %v1334_v51 }
 0x286   : > { %1335 = vrsqrt.f32 %v695_v52  ;;  %v1915_v12 = vmul.f32 0.0078125, %v629_v19  ;;  %vm728_vm0 = vmor %vm726_vm15, %vm727_vm14  ;;  %v812_v9 = vmax.f32 %v804_v13, 0.0  ;;  %vm736_vm2 = vweird.f32 %v695_v52 }
 0x287   : > { %v722_v58 = vmul.f32 %v1334_v51, %v721_v53  ;;  %v653_v50 = vpop.xlane.xlu2 %652  ;;  %v719_v0 = vsel %vm718_vm13, %v1332_v25, %v715_v54 }
 0x288   : > { %v680_v60 = vmul.f32 %v1915_v12, %v1915_v12  ;;  %v672_v61 = vmul.f32 0.0078125, %v653_v50  ;;  %v789_v62 = vmul.f32 %v781_v55, %v719_v0 }
 0x289   : > { %v723_v63 = vmul.f32 0.5, %v722_v58 }
 0x28a   : > { %v688_v1 = vsub.f32 %v672_v61, %v680_v60  ;;  %v797_v2 = vmul.f32 %v1784_v38, %v789_v62  ;;  %v784_v62 = vsub.f32 %v1885_v22, %v1915_v12 }
 0x28b   : > { %v724_v3 = vsub.f32 1.5, %v723_v63 }
 0x28c   : > { %v1336_v4 = vpop.eup %1335  ;;  %v696_v57 = vadd.f32 1e-05, %v688_v1  ;;  %v805_v5 = vadd.f32 %v1794_v33, %v797_v2 }
 0x28d   : > { %v725_v6 = vmul.f32 %v1334_v51, %v724_v3  ;;  %v731_v46 = vmul.f32 %v1336_v4, %v695_v52  ;;  %v631_v40 = vpop.xlane.xlu1 %630  ;;  %vm737_vm1 = vweird.f32 %v1336_v4 }
 0x28e   : > { %1337 = vrsqrt.f32 %v696_v57  ;;  %v1923_v7 = vmul.f32 0.0078125, %v631_v40  ;;  %v813_v59 = vmax.f32 %v805_v5, 0.0  ;;  %vm738_vm3 = vmor %vm736_vm2, %vm737_vm1  ;;  %vm746_vm5 = vweird.f32 %v696_v57 }
 0x28f   : > { %v732_v10 = vmul.f32 %v1336_v4, %v731_v46  ;;  %v655_v11 = vpop.xlane.xlu0 %654  ;;  %v729_v56 = vsel %vm728_vm0, %v1334_v51, %v725_v6 }
 0x290   : > { %v681_v16 = vmul.f32 %v1923_v7, %v1923_v7  ;;  %v673_v8 = vmul.f32 0.0078125, %v655_v11  ;;  %v847_v20 = vpack.c.bf16 %v813_v59, %v812_v9  ;;  %v790_v15 = vmul.f32 %v782_v45, %v729_v56 }
 0x291   : > { %v733_v34 = vmul.f32 0.5, %v732_v10  ;;  %v785_v9 = vsub.f32 %v1890_v24, %v1923_v7 }
 0x292   : > { %v689_v21 = vsub.f32 %v673_v8, %v681_v16  ;;  %862 = vmatmul.bf16.vlgmr.msra.gmra.mxu2 %v847_v20  ;;  %v798_v36 = vmul.f32 %v1784_v38, %v790_v15 }
 0x293   : > { %v734_v23 = vsub.f32 1.5, %v733_v34 }
 0x294   : > { %v1338_v25 = vpop.eup %1337  ;;  %v697_v26 = vadd.f32 1e-05, %v689_v21  ;;  %v806_v41 = vadd.f32 %v1794_v33, %v798_v36 }
 0x295   : > { %v735_v28 = vmul.f32 %v1336_v4, %v734_v23  ;;  %v741_v30 = vmul.f32 %v1338_v25, %v696_v57  ;;  %v633_v32 = vpop.xlane.xlu1 %632  ;;  %vm747_vm4 = vweird.f32 %v1338_v25 }
 0x296   : > { %1339 = vrsqrt.f32 %v697_v26  ;;  %v1931_v14 = vmul.f32 0.0078125, %v633_v32  ;;  %vm748_vm6 = vmor %vm746_vm5, %vm747_vm4  ;;  %v814_v58 = vmax.f32 %v806_v41, 0.0  ;;  %vm756_vm8 = vweird.f32 %v697_v26 }
 0x297   : > { %v742_v37 = vmul.f32 %v1338_v25, %v741_v30  ;;  %v657_v18 = vpop.xlane.xlu0 %656  ;;  %v739_v39 = vsel %vm738_vm3, %v1336_v4, %v735_v28 }
 0x298   : > { %v682_v44 = vmul.f32 %v1931_v14, %v1931_v14  ;;  %v674_v43 = vmul.f32 0.0078125, %v657_v18  ;;  %v791_v47 = vmul.f32 %v783_v17, %v739_v39 }
 0x299   : > { %v743_v42 = vmul.f32 0.5, %v742_v37 }
 0x29a   : > { %v690_v48 = vsub.f32 %v674_v43, %v682_v44  ;;  %v799_v49 = vmul.f32 %v1784_v38, %v791_v47 }
 0x29b   : > { %v744_v35 = vsub.f32 1.5, %v743_v42 }
 0x29c   : > { %v1340_v51 = vpop.eup %1339  ;;  %v698_v52 = vadd.f32 1e-05, %v690_v48  ;;  %v807_v54 = vadd.f32 %v1794_v33, %v799_v49  ;;  %v1312_v48 = vld [vmem:[#allocation7 + $0x2] ss:$0 sm:$0xff] }
 0x29d   : > { %v745_v53 = vmul.f32 %v1338_v25, %v744_v35  ;;  %v751_v19 = vmul.f32 %v1340_v51, %v697_v26  ;;  %v635_v55 = vpop.xlane.xlu2 %634  ;;  %vm757_vm7 = vweird.f32 %v1340_v51 }
 0x29e   : > { %1341 = vrsqrt.f32 %v698_v52  ;;  %v667_v29 = vmul.f32 0.0078125, %v635_v55  ;;  %v815_v50 = vmax.f32 %v807_v54, 0.0  ;;  %vm758_vm9 = vmor %vm756_vm8, %vm757_vm7  ;;  %vm766_vm11 = vweird.f32 %v698_v52 }
 0x29f   : > { %v752_v0 = vmul.f32 %v1340_v51, %v751_v19  ;;  %v659_v60 = vpop.xlane.xlu1 %658  ;;  %v749_v61 = vsel %vm748_vm6, %v1338_v25, %v745_v53  ;;  %v786_v25 = vsub.f32 %v1895_v27, %v1931_v14 }
 0x2a0   : > { %v683_v63 = vmul.f32 %v667_v29, %v667_v29  ;;  %v675_v1 = vmul.f32 0.0078125, %v659_v60  ;;  %v848_v2 = vpack.c.bf16 %v815_v50, %v814_v58  ;;  %v792_v4 = vmul.f32 %v784_v62, %v749_v61 }
 0x2a1   : > { %v753_v13 = vmul.f32 0.5, %v752_v0  ;;  %v787_v36 = vsub.f32 %v1900_v31, %v667_v29 }
 0x2a2   : > { %v691_v3 = vsub.f32 %v675_v1, %v683_v63  ;;  %867 = vmatmul.bf16.gmra.mxu2 %v848_v2  ;;  %v800_v22 = vmul.f32 %v1784_v38, %v792_v4 }
 0x2a3   : > { %v754_v57 = vsub.f32 1.5, %v753_v13 }
 0x2a4   : > { %v1342_v5 = vpop.eup %1341  ;;  %v699_v6 = vadd.f32 1e-05, %v691_v3  ;;  %v808_v45 = vadd.f32 %v1794_v33, %v800_v22 }
 0x2a5   : > { %v755_v46 = vmul.f32 %v1340_v51, %v754_v57  ;;  %v761_v40 = vmul.f32 %v1342_v5, %v698_v52  ;;  %vm767_vm10 = vweird.f32 %v1342_v5 }
 0x2a6   : > { %1343 = vrsqrt.f32 %v699_v6  ;;  %vm768_vm12 = vmor %vm766_vm11, %vm767_vm10  ;;  %v816_v7 = vmax.f32 %v808_v45, 0.0  ;;  %vm776_vm14 = vweird.f32 %v699_v6 }
 0x2a7   : > { %v762_v12 = vmul.f32 %v1342_v5, %v761_v40  ;;  %v759_v59 = vsel %vm758_vm9, %v1340_v51, %v755_v46 }
 0x2a8   : > { %v793_v10 = vmul.f32 %v785_v9, %v759_v59 }
 0x2a9   : > { %v763_v11 = vmul.f32 0.5, %v762_v12 }
 0x2aa   : > { %v801_v56 = vmul.f32 %v1784_v38, %v793_v10 }
 0x2ab   : > { %v764_v16 = vsub.f32 1.5, %v763_v11 }
 0x2ac   : > { %v1344_v8 = vpop.eup %1343  ;;  %v809_v20 = vadd.f32 %v1794_v33, %v801_v56 }
 0x2ad   : > { %v765_v34 = vmul.f32 %v1342_v5, %v764_v16  ;;  %v771_v24 = vmul.f32 %v1344_v8, %v699_v6  ;;  %vm777_vm13 = vweird.f32 %v1344_v8 }
 0x2ae   : > { %v817_v21 = vmax.f32 %v809_v20, 0.0  ;;  %vm778_vm15 = vmor %vm776_vm14, %vm777_vm13 }
 0x2af   : > { %v772_v15 = vmul.f32 %v1344_v8, %v771_v24  ;;  %v769_v23 = vsel %vm768_vm12, %v1342_v5, %v765_v34 }
 0x2b0   : > { %v849_v26 = vpack.c.bf16 %v817_v21, %v816_v7  ;;  %v794_v30 = vmul.f32 %v786_v25, %v769_v23 }
 0x2b1   : > { %v773_v28 = vmul.f32 0.5, %v772_v15 }
 0x2b2   : > { %872 = vmatmul.bf16.gmra.mxu2 %v849_v26  ;;  %v802_v37 = vmul.f32 %v1784_v38, %v794_v30 }
 0x2b3   : > { %v774_v32 = vsub.f32 1.5, %v773_v28 }
 0x2b4   : > { %v810_v43 = vadd.f32 %v1794_v33, %v802_v37 }
 0x2b5   : > { %v775_v17 = vmul.f32 %v1344_v8, %v774_v32 }
 0x2b6   : > { %v818_v14 = vmax.f32 %v810_v43, 0.0 }
 0x2b7   : > { %v779_v18 = vsel %vm778_vm15, %v1344_v8, %v775_v17 }
 0x2b8   : > { %v795_v39 = vmul.f32 %v787_v36, %v779_v18 }
 0x2ba   : > { %v803_v44 = vmul.f32 %v1784_v38, %v795_v39 }
 0x2bc   : > { %v811_v27 = vadd.f32 %v1794_v33, %v803_v44 }
 0x2be   : > { %v819_v47 = vmax.f32 %v811_v27, 0.0 }
 0x2c0   : > { %v850_v42 = vpack.c.bf16 %v819_v47, %v818_v14 }
 0x2c2   : > { %877 = vmatmul.bf16.gmra.mxu2 %v850_v42 }
 0x315   : > { %v863_v49 = vpop.f32.mrf.mxu2 }
 0x316   : > { %v1954_v41 = vadd.f32 %v1312_v48, %v863_v49 }
 0x318   : > { %883 = vadd.xlane.f32.xlu2 %v1954_v41  ;;  %v899_v31 = vmul.f32 %v1954_v41, %v1954_v41 }
 0x31a   : > { %907 = vadd.xlane.f32.xlu1 %v899_v31 }
 0x31d   : > { %v865_v35 = vpop.f32.mrf.mxu2 }
 0x31e   : > { %v1959_v51 = vadd.f32 %v1312_v48, %v865_v35 }
 0x320   : > { %885 = vadd.xlane.f32.xlu0 %v1959_v51  ;;  %v900_v52 = vmul.f32 %v1959_v51, %v1959_v51 }
 0x322   : > { %909 = vadd.xlane.f32.xlu2 %v900_v52 }
 0x325   : > { %v868_v54 = vpop.f32.mrf.mxu2 }
 0x326   : > { %v1964_v53 = vadd.f32 %v1312_v48, %v868_v54 }
 0x328   : > { %887 = vadd.xlane.f32.xlu1 %v1964_v53  ;;  %v901_v19 = vmul.f32 %v1964_v53, %v1964_v53 }
 0x32a   : > { %911 = vadd.xlane.f32.xlu0 %v901_v19 }
 0x32d   : > { %v870_v55 = vpop.f32.mrf.mxu2 }
 0x32e   : > { %v1969_v29 = vadd.f32 %v1312_v48, %v870_v55 }
 0x330   : > { %889 = vadd.xlane.f32.xlu2 %v1969_v29  ;;  %v902_v58 = vmul.f32 %v1969_v29, %v1969_v29 }
 0x332   : > { %913 = vadd.xlane.f32.xlu1 %v902_v58 }
 0x335   : > { %v873_v50 = vpop.f32.mrf.mxu2 }
 0x336   : > { %v1974_v0 = vadd.f32 %v1312_v48, %v873_v50 }
 0x338   : > { %891 = vadd.xlane.f32.xlu0 %v1974_v0  ;;  %v903_v60 = vmul.f32 %v1974_v0, %v1974_v0 }
 0x33a   : > { %915 = vadd.xlane.f32.xlu2 %v903_v60 }
 0x33d   : > { %v875_v61 = vpop.f32.mrf.mxu2 }
 0x33e   : > { %v1979_v62 = vadd.f32 %v1312_v48, %v875_v61 }
 0x340   : > { %893 = vadd.xlane.f32.xlu1 %v1979_v62  ;;  %v904_v57 = vmul.f32 %v1979_v62, %v1979_v62 }
 0x345   : > { %v878_v63 = vpop.f32.mrf.mxu2 }
 0x346   : > { %v1982_v1 = vadd.f32 %v1312_v48, %v878_v63 }
 0x348   : > { %895 = vadd.xlane.f32.xlu2 %v1982_v1  ;;  %v905_v2 = vmul.f32 %v1982_v1, %v1982_v1 }
 0x34a   : > { %919 = vadd.xlane.f32.xlu1 %v905_v2 }
 0x34d   : > { %v880_v13 = vpop.f32.mrf.mxu2 }
 0x34e   : > { %v1987_v3 = vadd.f32 %v1312_v48, %v880_v13 }
 0x350   : > { %897 = vadd.xlane.f32.xlu0 %v1987_v3  ;;  %v906_v4 = vmul.f32 %v1987_v3, %v1987_v3 }
 0x352   : > { %921 = vadd.xlane.f32.xlu2 %v906_v4 }
 0x358   : > { %917 = vadd.xlane.f32.xlu0 %v904_v57  ;;  %v1361_v57 = vld [vmem:[%s1679_s6] sm:$0xff] }
 0x38b   : > { %v884_v5 = vpop.xlane.xlu2 %883 }
 0x38c   : > { %v923_v6 = vmul.f32 0.0078125, %v884_v5 }
 0x38d   : > { %v908_v46 = vpop.xlane.xlu1 %907 }
 0x38e   : > { %v939_v40 = vmul.f32 %v923_v6, %v923_v6  ;;  %v931_v9 = vmul.f32 0.0078125, %v908_v46  ;;  %v1043_v39 = vsub.f32 %v1954_v41, %v923_v6 }
 0x390   : > { %v947_v22 = vsub.f32 %v931_v9, %v939_v40 }
 0x392   : > { %v955_v12 = vadd.f32 1e-05, %v947_v22 }
 0x393   : > { %v886_v59 = vpop.xlane.xlu0 %885 }
 0x394   : > { %1345 = vrsqrt.f32 %v955_v12  ;;  %v924_v10 = vmul.f32 0.0078125, %v886_v59  ;;  %vm969_vm1 = vweird.f32 %v955_v12 }
 0x395   : > { %v910_v11 = vpop.xlane.xlu2 %909 }
 0x396   : > { %v940_v56 = vmul.f32 %v924_v10, %v924_v10  ;;  %v932_v45 = vmul.f32 0.0078125, %v910_v11  ;;  %v1044_v61 = vsub.f32 %v1959_v51, %v924_v10 }
 0x398   : > { %v948_v16 = vsub.f32 %v932_v45, %v940_v56 }
 0x39a   : > { %v1346_v8 = vpop.eup %1345  ;;  %v956_v20 = vadd.f32 1e-05, %v948_v16 }
 0x39b   : > { %v964_v34 = vmul.f32 %v1346_v8, %v955_v12  ;;  %v888_v24 = vpop.xlane.xlu1 %887  ;;  %vm970_vm0 = vweird.f32 %v1346_v8 }
 0x39c   : > { %1347 = vrsqrt.f32 %v956_v20  ;;  %v1994_v7 = vmul.f32 0.0078125, %v888_v24  ;;  %vm971_vm2 = vmor %vm969_vm1, %vm970_vm0  ;;  %vm979_vm4 = vweird.f32 %v956_v20  ;;  %v1362_v24 = vld [vmem:[%s1679_s6 + $0x8] sm:$0xff] }
 0x39d   : > { %v965_v21 = vmul.f32 %v1346_v8, %v964_v34  ;;  %v912_v15 = vpop.xlane.xlu0 %911 }
 0x39e   : > { %v941_v23 = vmul.f32 %v1994_v7, %v1994_v7  ;;  %v933_v25 = vmul.f32 0.0078125, %v912_v15 }
 0x39f   : > { %v966_v26 = vmul.f32 0.5, %v965_v21 }
 0x3a0   : > { %v949_v28 = vsub.f32 %v933_v25, %v941_v23 }
 0x3a1   : > { %v967_v30 = vsub.f32 1.5, %v966_v26 }
 0x3a2   : > { %v1348_v32 = vpop.eup %1347  ;;  %v957_v17 = vadd.f32 1e-05, %v949_v28 }
 0x3a3   : > { %v968_v36 = vmul.f32 %v1346_v8, %v967_v30  ;;  %v974_v37 = vmul.f32 %v1348_v32, %v956_v20  ;;  %v890_v18 = vpop.xlane.xlu2 %889  ;;  %vm980_vm3 = vweird.f32 %v1348_v32 }
 0x3a4   : > { %1349 = vrsqrt.f32 %v957_v17  ;;  %v1999_v44 = vmul.f32 0.0078125, %v890_v18  ;;  %vm981_vm5 = vmor %vm979_vm4, %vm980_vm3  ;;  %vm989_vm7 = vweird.f32 %v957_v17 }
 0x3a5   : > { %v972_v43 = vsel %vm971_vm2, %v1346_v8, %v968_v36  ;;  %v975_v27 = vmul.f32 %v1348_v32, %v974_v37  ;;  %v914_v14 = vpop.xlane.xlu1 %913  ;;  %v1045_v8 = vsub.f32 %v1964_v53, %v1994_v7  ;;  %v2031_v53 = vld [vmem:[%s2106_s4] ss:$0 sm:$0xff] }
 0x3a6   : > { %v1051_v47 = vmul.f32 %v1043_v39, %v972_v43  ;;  %v942_v42 = vmul.f32 %v1999_v44, %v1999_v44  ;;  %v934_v48 = vmul.f32 0.0078125, %v914_v14  ;;  %v1046_v36 = vsub.f32 %v1969_v29, %v1999_v44 }
 0x3a7   : > { %v976_v49 = vmul.f32 0.5, %v975_v27  ;;  %v1365_v27 = vld [vmem:[%s1679_s6 + $0x10] sm:$0xff] }
 0x3a8   : > { %v1059_v31 = vmul.f32 %v1784_v38, %v1051_v47  ;;  %v950_v35 = vsub.f32 %v934_v48, %v942_v42 }
 0x3a9   : > { %v977_v52 = vsub.f32 1.5, %v976_v49 }
 0x3aa   : > { %v1350_v41 = vpop.eup %1349  ;;  %v1067_v54 = vadd.f32 %v1794_v33, %v1059_v31  ;;  %v958_v19 = vadd.f32 1e-05, %v950_v35 }
 0x3ab   : > { %v978_v55 = vmul.f32 %v1348_v32, %v977_v52  ;;  %v984_v58 = vmul.f32 %v1350_v41, %v957_v17  ;;  %v892_v50 = vpop.xlane.xlu0 %891  ;;  %vm990_vm6 = vweird.f32 %v1350_v41 }
 0x3ac   : > { %v1075_v60 = vmax.f32 %v1067_v54, 0.0  ;;  %1351 = vrsqrt.f32 %v958_v19  ;;  %v2006_v63 = vmul.f32 0.0078125, %v892_v50  ;;  %vm991_vm8 = vmor %vm989_vm7, %vm990_vm6  ;;  %vm999_vm10 = vweird.f32 %v958_v19 }
 0x3ad   : > { %v982_v2 = vsel %vm981_vm5, %v1348_v32, %v978_v55  ;;  %v985_v13 = vmul.f32 %v1350_v41, %v984_v58  ;;  %v916_v4 = vpop.xlane.xlu2 %915 }
 0x3ae   : > { %v1083_v5 = vadd.f32 %v1361_v57, %v1075_v60  ;;  %v1052_v6 = vmul.f32 %v1044_v61, %v982_v2  ;;  %v943_v46 = vmul.f32 %v2006_v63, %v2006_v63  ;;  %v935_v9 = vmul.f32 0.0078125, %v916_v4  ;;  %v1366_v61 = vld [vmem:[%s1679_s6 + $0x18] sm:$0xff] }
 0x3af   : > { %v986_v40 = vmul.f32 0.5, %v985_v13  ;;  %v1047_v50 = vsub.f32 %v1974_v0, %v2006_v63 }
 0x3b0   : > { %1091 = vst [vmem:[%s2013_s14] sm:$0xff] %v1083_v5  ;;  %v1060_v51 = vmul.f32 %v1784_v38, %v1052_v6  ;;  %v951_v12 = vsub.f32 %v935_v9, %v943_v46 }
 0x3b1   : > { %v987_v22 = vsub.f32 1.5, %v986_v40 }
 0x3b2   : > { %v1352_v59 = vpop.eup %1351  ;;  %v1068_v10 = vadd.f32 %v1794_v33, %v1060_v51  ;;  %v959_v45 = vadd.f32 1e-05, %v951_v12  ;;  %v2025_v33 = vld [vmem:[%s2105_s3] ss:$0 sm:$0xff] }
 0x3b3   : > { %v988_v11 = vmul.f32 %v1350_v41, %v987_v22  ;;  %v994_v56 = vmul.f32 %v1352_v59, %v958_v19  ;;  %v894_v38 = vpop.xlane.xlu1 %893  ;;  %vm1000_vm9 = vweird.f32 %v1352_v59 }
 0x3b4   : > { %v1076_v16 = vmax.f32 %v1068_v10, 0.0  ;;  %1353 = vrsqrt.f32 %v959_v45  ;;  %vm1001_vm11 = vmor %vm999_vm10, %vm1000_vm9  ;;  %vm1009_vm13 = vweird.f32 %v959_v45  ;;  %v928_v6 = vmul.f32 0.0078125, %v894_v38 }
 0x3b5   : > { %v992_v20 = vsel %vm991_vm8, %v1350_v41, %v988_v11  ;;  %v995_v34 = vmul.f32 %v1352_v59, %v994_v56 }
 0x3b6   : > { %v1084_v21 = vadd.f32 %v1362_v24, %v1076_v16  ;;  %v1053_v15 = vmul.f32 %v1045_v8, %v992_v20  ;;  %v944_v22 = vmul.f32 %v928_v6, %v928_v6 }
 0x3b7   : > { %v996_v23 = vmul.f32 0.5, %v995_v34 }
 0x3b8   : > { %1092 = vst [vmem:[%s2013_s14 + $0x8] sm:$0xff] %v1084_v21  ;;  %v1061_v25 = vmul.f32 %v2025_v33, %v1053_v15 }
 0x3b9   : > { %v997_v26 = vsub.f32 1.5, %v996_v23 }
 0x3ba   : > { %v1069_v7 = vadd.f32 %v2031_v53, %v1061_v25  ;;  %v1354_v28 = vpop.eup %1353 }
 0x3bb   : > { %v998_v30 = vmul.f32 %v1352_v59, %v997_v26  ;;  %v896_v32 = vpop.xlane.xlu2 %895  ;;  %v1004_v37 = vmul.f32 %v1354_v28, %v959_v45  ;;  %vm1010_vm12 = vweird.f32 %v1354_v28  ;;  %v1367_v45 = vld [vmem:[%s1679_s6 + $0x20] sm:$0xff] }
 0x3bc   : > { %v1077_v17 = vmax.f32 %v1069_v7, 0.0  ;;  %v2036_v18 = vmul.f32 0.0078125, %v896_v32  ;;  %vm1011_vm14 = vmor %vm1009_vm13, %vm1010_vm12 }
 0x3bd   : > { %v1002_v39 = vsel %vm1001_vm11, %v1352_v59, %v998_v30  ;;  %v920_v43 = vpop.xlane.xlu1 %919  ;;  %v1005_v42 = vmul.f32 %v1354_v28, %v1004_v37 }
 0x3be   : > { %v1085_v14 = vadd.f32 %v1365_v27, %v1077_v17  ;;  %v1054_v47 = vmul.f32 %v1046_v36, %v1002_v39  ;;  %v945_v48 = vmul.f32 %v2036_v18, %v2036_v18  ;;  %v937_v49 = vmul.f32 0.0078125, %v920_v43 }
 0x3bf   : > { %v1006_v35 = vmul.f32 0.5, %v1005_v42  ;;  %v1049_v15 = vsub.f32 %v1982_v1, %v2036_v18 }
 0x3c0   : > { %1093 = vst [vmem:[%s2013_s14 + $0x10] sm:$0xff] %v1085_v14  ;;  %v1062_v31 = vmul.f32 %v2025_v33, %v1054_v47  ;;  %v953_v29 = vsub.f32 %v937_v49, %v945_v48  ;;  %v1368_v14 = vld [vmem:[%s1679_s6 + $0x30] sm:$0xff] }
 0x3c1   : > { %v1007_v52 = vsub.f32 1.5, %v1006_v35  ;;  %v1048_v35 = vsub.f32 %v1979_v62, %v928_v6 }
 0x3c2   : > { %v1070_v44 = vadd.f32 %v2031_v53, %v1062_v31  ;;  %v961_v41 = vadd.f32 1e-05, %v953_v29 }
 0x3c3   : > { %v898_v54 = vpop.xlane.xlu0 %897  ;;  %v1008_v55 = vmul.f32 %v1354_v28, %v1007_v52 }
 0x3c4   : > { %v1078_v19 = vmax.f32 %v1070_v44, 0.0  ;;  %v930_v58 = vmul.f32 0.0078125, %v898_v54  ;;  %1355 = vrsqrt.f32 %v961_v41  ;;  %vm1029_vm0 = vweird.f32 %v961_v41  ;;  %v1369_v54 = vld [vmem:[%s1679_s6 + $0x38] sm:$0xff] }
 0x3c5   : > { %v922_v60 = vpop.xlane.xlu2 %921  ;;  %v1012_v13 = vsel %vm1011_vm14, %v1354_v28, %v1008_v55 }
 0x3c6   : > { %v1086_v2 = vadd.f32 %v1366_v61, %v1078_v19  ;;  %v946_v4 = vmul.f32 %v930_v58, %v930_v58  ;;  %v1055_v57 = vmul.f32 %v1047_v50, %v1012_v13  ;;  %v938_v5 = vmul.f32 0.0078125, %v922_v60 }
 0x3c7   : > { %v1050_v1 = vsub.f32 %v1987_v3, %v930_v58  ;;  %v1370_v58 = vld [vmem:[%s1679_s6 + $0x28] sm:$0xff] }
 0x3c8   : > { %1094 = vst [vmem:[%s2013_s14 + $0x18] sm:$0xff] %v1086_v2  ;;  %v1063_v46 = vmul.f32 %v2025_v33, %v1055_v57  ;;  %v954_v40 = vsub.f32 %v938_v5, %v946_v4 }
 0x3ca   : > { %v1356_v9 = vpop.eup %1355  ;;  %v1071_v51 = vadd.f32 %v2031_v53, %v1063_v46  ;;  %v962_v0 = vadd.f32 1e-05, %v954_v40 }
 0x3cb   : > { %v918_v63 = vpop.xlane.xlu0 %917  ;;  %v1024_v12 = vmul.f32 %v1356_v9, %v961_v41  ;;  %vm1030_vm15 = vweird.f32 %v1356_v9 }
 0x3cc   : > { %v936_v59 = vmul.f32 0.0078125, %v918_v63  ;;  %v1079_v10 = vmax.f32 %v1071_v51, 0.0  ;;  %1357 = vrsqrt.f32 %v962_v0  ;;  %vm1031_vm1 = vmor %vm1029_vm0, %vm1030_vm15  ;;  %vm1039_vm3 = vweird.f32 %v962_v0 }
 0x3cd   : > { %v1025_v11 = vmul.f32 %v1356_v9, %v1024_v12 }
 0x3ce   : > { %v952_v56 = vsub.f32 %v936_v59, %v944_v22  ;;  %v1087_v16 = vadd.f32 %v1367_v45, %v1079_v10 }
 0x3cf   : > { %v1026_v8 = vmul.f32 0.5, %v1025_v11 }
 0x3d0   : > { %v960_v20 = vadd.f32 1e-05, %v952_v56  ;;  %1095 = vst [vmem:[%s2013_s14 + $0x20] sm:$0xff] %v1087_v16 }
 0x3d1   : > { %v1027_v34 = vsub.f32 1.5, %v1026_v8 }
 0x3d2   : > { %1359 = vrsqrt.f32 %v960_v20  ;;  %v1358_v38 = vpop.eup %1357  ;;  %vm1019_vm6 = vweird.f32 %v960_v20 }
 0x3d3   : > { %v1028_v24 = vmul.f32 %v1356_v9, %v1027_v34  ;;  %v1034_v21 = vmul.f32 %v1358_v38, %v962_v0  ;;  %vm1040_vm2 = vweird.f32 %v1358_v38 }
 0x3d4   : > { %vm1041_vm4 = vmor %vm1039_vm3, %vm1040_vm2 }
 0x3d5   : > { %v1032_v23 = vsel %vm1031_vm1, %v1356_v9, %v1028_v24  ;;  %v1035_v25 = vmul.f32 %v1358_v38, %v1034_v21 }
 0x3d6   : > { %v1057_v26 = vmul.f32 %v1049_v15, %v1032_v23 }
 0x3d7   : > { %v1036_v28 = vmul.f32 0.5, %v1035_v25 }
 0x3d8   : > { %v1360_v7 = vpop.eup %1359  ;;  %v1065_v30 = vmul.f32 %v2025_v33, %v1057_v26 }
 0x3d9   : > { %v1014_v32 = vmul.f32 %v1360_v7, %v960_v20  ;;  %v1037_v17 = vsub.f32 1.5, %v1036_v28  ;;  %vm1020_vm5 = vweird.f32 %v1360_v7 }
 0x3da   : > { %v1073_v36 = vadd.f32 %v2031_v53, %v1065_v30  ;;  %vm1021_vm7 = vmor %vm1019_vm6, %vm1020_vm5 }
 0x3db   : > { %v1015_v37 = vmul.f32 %v1360_v7, %v1014_v32  ;;  %v1038_v39 = vmul.f32 %v1358_v38, %v1037_v17 }
 0x3dc   : > { %v1081_v43 = vmax.f32 %v1073_v36, 0.0 }
 0x3dd   : > { %v1016_v18 = vmul.f32 0.5, %v1015_v37  ;;  %v1042_v27 = vsel %vm1041_vm4, %v1358_v38, %v1038_v39 }
 0x3de   : > { %v1089_v47 = vadd.f32 %v1368_v14, %v1081_v43  ;;  %v1058_v42 = vmul.f32 %v1050_v1, %v1042_v27 }
 0x3df   : > { %v1017_v48 = vsub.f32 1.5, %v1016_v18 }
 0x3e0   : > { %1097 = vst [vmem:[%s2013_s14 + $0x30] sm:$0xff] %v1089_v47  ;;  %v1066_v49 = vmul.f32 %v2025_v33, %v1058_v42 }
 0x3e1   : > { %v1018_v31 = vmul.f32 %v1360_v7, %v1017_v48 }
 0x3e2   : > { %v1074_v3 = vadd.f32 %v2031_v53, %v1066_v49 }
 0x3e3   : > { %v1022_v29 = vsel %vm1021_vm7, %v1360_v7, %v1018_v31 }
 0x3e4   : > { %v1056_v44 = vmul.f32 %v1048_v35, %v1022_v29  ;;  %v1082_v52 = vmax.f32 %v1074_v3, 0.0 }
 0x3e6   : > { %v1064_v41 = vmul.f32 %v2025_v33, %v1056_v44  ;;  %v1090_v19 = vadd.f32 %v1369_v54, %v1082_v52 }
 0x3e8   : > { %v1072_v62 = vadd.f32 %v2031_v53, %v1064_v41  ;;  %1098 = vst [vmem:[%s2013_s14 + $0x38] sm:$0xff] %v1090_v19 }
 0x3ea   : > { %v1080_v55 = vmax.f32 %v1072_v62, 0.0 }
 0x3ec   : > { %v1088_v50 = vadd.f32 %v1370_v58, %v1080_v55 }
 0x3ee   : > { %1096 = vst [vmem:[%s2013_s14 + $0x28] sm:$0xff] %v1088_v50 }
 0x3ef   : > { %1488 = shalt.err (!%p1485_p10)
}
 0x3f0   : > { %s1539_s12 = smov 128   ;;  %s1540_s6 = smov 8  }
 0x3f1   : > { %1245 = dma.vmem_to_hbm [thread:$0]  (%p1643_p5), %s1113_s22, 1024, %s1115_s23, %s1100_s24, %s1539_s12, %s1539_s12, %s1540_s6  }
 0x3f2 PF: > { %s1129_s14 = sand.u32 1, %s1519_s18   ;;  %p2121_p12 = scmp.ge.s32.totalorder %s1531_s21, 2 }
 0x3f3   : > { %s1130_s8 = scalar_lea.sflag [#allocation4], %s1129_s14 }
 0x3f4   : > { %p1259_p13 = pnand %p2121_p12, %p1606_p6 }
 0x3f6   : > { %p1260_p0 = pneg %p1259_p13 }
 0x3f8   : > { %1514 = dma.done.wait (%p1260_p0), %s1130_s8, 1024  }
 0x3f9   : > { %1516 = vsyncadd (%p1260_p0), %s1130_s8, 4294966272  ;;  %p19_p3 = scmp.ge.s32.totalorder %s1630_s16, 4   ;;  %s2122_s18 = smov %s1523_s19 }
 0x3fa   : > { %s2123_s19 = smov %s1527_s20  ;;  %s2124_s20 = smov %s1639_s26 }
 0x3fb   : > { %s2125_s21 = smov %s1630_s16  ;;  %21 = sbr.rel (!%p19_p3) target bundleno = 6 (0x6), region = 97 }
 0x400   :  { %1136 = vsyncpa [#allocation3], 1 }
 0x401   :  { %1138 = vsyncpa [#allocation3 + $0x1], 1 }
 0x402   :  { %1139 = vsyncpa [#allocation6], 1 }
 0x403   :  { %1140 = vsyncpa [#allocation4], 1 }
 0x404   :  { %1142 = vsyncpa [#allocation4 + $0x1], 1 }

</bundles_post_ra>
